<compile_context>
chip_gen: v7x
topology: tpu7x:2x2x1
jax: 0.10.0
libtpu: 0.0.40
codegen_flags: <defaults>
</compile_context>

<pallas_src>
import functools
import math

import jax
import jax.numpy as jnp
from jax.experimental import pallas as pl
from jax.experimental.pallas import tpu as pltpu


_LN_EPS = 1e-6

_CPARAMS = pltpu.CompilerParams(
    dimension_semantics=("parallel",),
    vmem_limit_bytes=40 * 1024 * 1024,   # fits v5e/v6e (128 MiB) and v7x (64 MiB/TC)
)


# ----------------------------- in-kernel helpers -----------------------------

def _gelu_tanh(x):
    # TODO(synk): reference uses exact erf-based GELU; Mosaic has no erf lowering,
    # so the tanh approximation is fused in instead.
    c = math.sqrt(2.0 / math.pi)
    return 0.5 * x * (1.0 + jnp.tanh(c * (x + 0.044715 * x * x * x)))


def _layernorm_f32(x, g, b, eps):
    mean = jnp.mean(x, axis=-1, keepdims=True)
    xc = x - mean
    var = jnp.mean(xc * xc, axis=-1, keepdims=True)
    return xc * jax.lax.rsqrt(var + eps) * g + b


# ----------------------------- Pallas kernels -----------------------------

def _patch_embed_kernel(x_ref, w_ref, b_ref, o_ref):
    # One batch of flattened patches: (HW, C*ph*pw) @ (C*ph*pw, D) + b
    y = jnp.dot(x_ref[0].astype(jnp.bfloat16), w_ref[...],
                preferred_element_type=jnp.float32)
    o_ref[0] = y + b_ref[...]


def _attn_block_kernel(x_ref, g_ref, bt_ref, wqkv_ref, bqkv_ref, wo_ref, bo_ref,
                       o_ref, qkv_scr, *, num_heads, eps):
    """Fused: LN1 -> QKV -> per-head attention -> out-proj -> +residual.

    Blocks: x/o are (1, N, D); weights are full, VMEM-resident.  The attention
    scale is pre-folded into the query weights/bias (prepare_params).
    """
    x = x_ref[0]                                           # (N, D) f32
    D = x.shape[-1]
    d = D // num_heads

    xn = _layernorm_f32(x, g_ref[...], bt_ref[...], eps)
    qkv = jnp.dot(xn.astype(jnp.bfloat16), wqkv_ref[...],
                  preferred_element_type=jnp.float32) + bqkv_ref[...]
    qkv_scr[...] = qkv.astype(jnp.bfloat16)                # (N, 3D) bf16 in VMEM

    acc = x + bo_ref[...]                                  # residual + out bias (f32)
    for h in range(num_heads):                             # static unrolled head loop
        lo, hi = h * d, (h + 1) * d
        q = qkv_scr[:, lo:hi]                              # (N, d) bf16 (pre-scaled)
        k = qkv_scr[:, D + lo:D + hi]
        v = qkv_scr[:, 2 * D + lo:2 * D + hi]
        s = jax.lax.dot_general(q, k, (((1,), (1,)), ((), ())),
                                preferred_element_type=jnp.float32)  # (N, N)
        s = s - jnp.max(s, axis=-1, keepdims=True)
        p = jnp.exp(s)
        p = p * pl.reciprocal(jnp.sum(p, axis=-1, keepdims=True), approx=True)
        ctx = jnp.dot(p.astype(jnp.bfloat16), v,
                      preferred_element_type=jnp.float32)            # (N, d)
        # Fold this head's context straight through its slice of W_out.
        acc = acc + jnp.dot(ctx.astype(jnp.bfloat16), wo_ref[lo:hi, :],
                            preferred_element_type=jnp.float32)
    o_ref[0] = acc


def _mlp_block_kernel(x_ref, g_ref, bt_ref, w1_ref, b1_ref, w2_ref, b2_ref,
                      o_ref, *, eps):
    """Fused: LN2 -> fc1 -> GELU -> fc2 -> +residual.  Hidden stays in VMEM."""
    x = x_ref[0]                                           # (N, D) f32
    xn = _layernorm_f32(x, g_ref[...], bt_ref[...], eps)
    h = jnp.dot(xn.astype(jnp.bfloat16), w1_ref[...],
                preferred_element_type=jnp.float32) + b1_ref[...]
    h = _gelu_tanh(h)
    y = jnp.dot(h.astype(jnp.bfloat16), w2_ref[...],
                preferred_element_type=jnp.float32) + b2_ref[...]
    o_ref[0] = x + y


def _layernorm3_kernel(x_ref, g_ref, b_ref, o_ref, *, eps):
    o_ref[0] = _layernorm_f32(x_ref[0], g_ref[...], b_ref[...], eps)


def _l2norm3_kernel(x_ref, o_ref):
    x = x_ref[0]
    o_ref[0] = x * jax.lax.rsqrt(jnp.sum(x * x, axis=-1, keepdims=True))


def _l2norm2_kernel(x_ref, o_ref):
    x = x_ref[...]
    o_ref[...] = x * jax.lax.rsqrt(jnp.sum(x * x, axis=-1, keepdims=True))


# ----------------------------- Pallas wrappers -----------------------------

def patch_embed(xp, w_bf16, b):
    """xp: (B, HW, C*ph*pw) flattened patches -> (B, HW, D)."""
    B, HW, K = xp.shape
    D = w_bf16.shape[1]
    return pl.pallas_call(
        _patch_embed_kernel,
        out_shape=jax.ShapeDtypeStruct((B, HW, D), jnp.float32),
        grid=(B,),
        in_specs=[pl.BlockSpec((1, HW, K), lambda i: (i, 0, 0)),
                  pl.BlockSpec((K, D), lambda i: (0, 0)),
                  pl.BlockSpec((1, D), lambda i: (0, 0))],
        out_specs=pl.BlockSpec((1, HW, D), lambda i: (i, 0, 0)),
        compiler_params=_CPARAMS,
    )(xp, w_bf16, b.reshape(1, D))


def attention_block(x, p, num_heads):
    B, N, D = x.shape
    kern = functools.partial(_attn_block_kernel, num_heads=num_heads, eps=_LN_EPS)
    return pl.pallas_call(
        kern,
        out_shape=jax.ShapeDtypeStruct((B, N, D), jnp.float32),
        grid=(B,),
        in_specs=[pl.BlockSpec((1, N, D), lambda i: (i, 0, 0)),
                  pl.BlockSpec((1, D), lambda i: (0, 0)),
                  pl.BlockSpec((1, D), lambda i: (0, 0)),
                  pl.BlockSpec((D, 3 * D), lambda i: (0, 0)),
                  pl.BlockSpec((1, 3 * D), lambda i: (0, 0)),
                  pl.BlockSpec((D, D), lambda i: (0, 0)),
                  pl.BlockSpec((1, D), lambda i: (0, 0))],
        out_specs=pl.BlockSpec((1, N, D), lambda i: (i, 0, 0)),
        scratch_shapes=[pltpu.VMEM((N, 3 * D), jnp.bfloat16)],
        compiler_params=_CPARAMS,
    )(x, p["ln1_g"].reshape(1, D), p["ln1_b"].reshape(1, D),
      p["w_qkv"], p["b_qkv"].reshape(1, 3 * D),
      p["wo"], p["bo"].reshape(1, D))


def mlp_block(x, p):
    B, N, D = x.shape
    F = p["w1"].shape[1]
    kern = functools.partial(_mlp_block_kernel, eps=_LN_EPS)
    return pl.pallas_call(
        kern,
        out_shape=jax.ShapeDtypeStruct((B, N, D), jnp.float32),
        grid=(B,),
        in_specs=[pl.BlockSpec((1, N, D), lambda i: (i, 0, 0)),
                  pl.BlockSpec((1, D), lambda i: (0, 0)),
                  pl.BlockSpec((1, D), lambda i: (0, 0)),
                  pl.BlockSpec((D, F), lambda i: (0, 0)),
                  pl.BlockSpec((1, F), lambda i: (0, 0)),
                  pl.BlockSpec((F, D), lambda i: (0, 0)),
                  pl.BlockSpec((1, D), lambda i: (0, 0))],
        out_specs=pl.BlockSpec((1, N, D), lambda i: (i, 0, 0)),
        compiler_params=_CPARAMS,
    )(x, p["ln2_g"].reshape(1, D), p["ln2_b"].reshape(1, D),
      p["w1"], p["b1"].reshape(1, F), p["w2"], p["b2"].reshape(1, D))


def layernorm3(x, gamma, beta):
    B, N, D = x.shape
    kern = functools.partial(_layernorm3_kernel, eps=_LN_EPS)
    return pl.pallas_call(
        kern,
        out_shape=jax.ShapeDtypeStruct((B, N, D), jnp.float32),
        grid=(B,),
        in_specs=[pl.BlockSpec((1, N, D), lambda i: (i, 0, 0)),
                  pl.BlockSpec((1, D), lambda i: (0, 0)),
                  pl.BlockSpec((1, D), lambda i: (0, 0))],
        out_specs=pl.BlockSpec((1, N, D), lambda i: (i, 0, 0)),
        compiler_params=_CPARAMS,
    )(x, gamma.reshape(1, D), beta.reshape(1, D))


def l2_normalize3(x):
    B, T, D = x.shape
    return pl.pallas_call(
        _l2norm3_kernel,
        out_shape=jax.ShapeDtypeStruct((B, T, D), jnp.float32),
        grid=(B,),
        in_specs=[pl.BlockSpec((1, T, D), lambda i: (i, 0, 0))],
        out_specs=pl.BlockSpec((1, T, D), lambda i: (i, 0, 0)),
        compiler_params=_CPARAMS,
    )(x)


def l2_normalize2(x):
    B, D = x.shape
    return pl.pallas_call(
        _l2norm2_kernel,
        out_shape=jax.ShapeDtypeStruct((B, D), jnp.float32),
        grid=(1,),
        in_specs=[pl.BlockSpec((B, D), lambda i: (0, 0))],
        out_specs=pl.BlockSpec((B, D), lambda i: (0, 0)),
        compiler_params=_CPARAMS,
    )(x)


# ----------------------------- Model pieces -----------------------------

def prompted_vit_forward(x, params, *, patch_size, img_size, num_heads,
                         num_layers, num_tokens, norm=True):
    B, C = x.shape[0], x.shape[1]
    ph, pw = patch_size
    Hp, Wp = img_size[0] // ph, img_size[1] // pw
    D = params["cls_token"].shape[-1]

    # ---- Embeddings: Conv2d(kernel=stride=patch) == per-patch matmul ----
    xp = x.reshape(B, C, Hp, ph, Wp, pw)
    xp = jnp.transpose(xp, (0, 2, 4, 1, 3, 5)).reshape(B, Hp * Wp, C * ph * pw)
    patches = patch_embed(xp, params["patch_w"], params["patch_b"])   # (B, HW, D)

    cls = jnp.broadcast_to(params["cls_token"], (B, 1, D))
    emb = jnp.concatenate([cls, patches], axis=1) + params["pos_emb"]  # (B, 1+HW, D)
    # dropout: inference identity

    # ---- incorporate_prompt ----
    prompts = jnp.broadcast_to(params["prompt_emb"], (B, num_tokens, D))
    hs = jnp.concatenate([emb[:, :1], prompts, emb[:, 1:]], axis=1)    # (B, N, D)

    # ---- forward_deep_prompt: per layer = 2 fused pallas_calls ----
    for i in range(num_layers):
        if i > 0 and i <= params["deep_prompt"].shape[0]:
            dp = jnp.broadcast_to(params["deep_prompt"][i - 1], (B, num_tokens, D))
            hs = jax.lax.dynamic_update_slice(hs, dp, (0, 1, 0))  # overwrite prompt rows
        blk = params["blocks"][i]
        hs = attention_block(hs, blk, num_heads)
        hs = mlp_block(hs, blk)

    encoded = layernorm3(hs, params["enc_g"], params["enc_b"])         # (B, N, D)

    # ---- PromptedVisionTransformer head ----
    global_embedding = encoded[:, 0]                                    # (B, D)
    visual_tokens = encoded[:, -(Hp * Wp):]                             # (B, HW, D)

    if norm:
        visual_tokens = l2_normalize3(visual_tokens)
    visual_embedding = jnp.transpose(
        visual_tokens.reshape(B, Hp, Wp, D), (0, 3, 1, 2))              # (B, D, Hp, Wp)

    global_embedding = l2_normalize2(global_embedding)                  # (B, D)

    features = (visual_embedding,)
    return [features, global_embedding]


# ----------------------------- parameters -----------------------------

def init_params(key, *, in_channels, patch_size, hidden, mlp_dim, num_layers,
                num_tokens, n_patches):
    ph, pw = patch_size
    keys = list(jax.random.split(key, 16 * num_layers + 16))
    it = iter(keys)

    def nrm(shape, scale=0.05):
        return scale * jax.random.normal(next(it), shape, dtype=jnp.float32)

    params = {
        "patch_w": nrm((hidden, in_channels, ph, pw)),   # PyTorch Conv2d layout (O,I,kh,kw)
        "patch_b": nrm((hidden,)),
        "cls_token": nrm((1, 1, hidden)),
        "pos_emb": nrm((1, n_patches + 1, hidden)),
        "enc_g": jnp.ones((hidden,), jnp.float32),
        "enc_b": jnp.zeros((hidden,), jnp.float32),
    }
    # prompt init matches the module: uniform(-val, val)
    val = math.sqrt(6.0 / float(3 * ph * pw + hidden))
    params["prompt_emb"] = jax.random.uniform(
        next(it), (1, num_tokens, hidden), minval=-val, maxval=val, dtype=jnp.float32)
    params["deep_prompt"] = jax.random.uniform(
        next(it), (num_layers - 1, num_tokens, hidden), minval=-val, maxval=val,
        dtype=jnp.float32)

    blocks = []
    for _ in range(num_layers):
        blocks.append(dict(
            ln1_g=jnp.ones((hidden,), jnp.float32),
            ln1_b=jnp.zeros((hidden,), jnp.float32),
            wq=nrm((hidden, hidden)), bq=nrm((hidden,)),
            wk=nrm((hidden, hidden)), bk=nrm((hidden,)),
            wv=nrm((hidden, hidden)), bv=nrm((hidden,)),
            wo=nrm((hidden, hidden)), bo=nrm((hidden,)),
            ln2_g=jnp.ones((hidden,), jnp.float32),
            ln2_b=jnp.zeros((hidden,), jnp.float32),
            w1=nrm((hidden, mlp_dim)), b1=nrm((mlp_dim,)),
            w2=nrm((mlp_dim, hidden)), b2=nrm((hidden,)),
        ))
    params["blocks"] = blocks
    return params


def prepare_params(raw, num_heads):
    """One-time prep: flatten patch conv, fuse QKV (scale folded into Q),
    cast matmul weights to bf16."""
    p = {k: v for k, v in raw.items() if k != "blocks"}
    hidden = raw["patch_w"].shape[0]
    head_dim = hidden // num_heads
    scale = 1.0 / math.sqrt(head_dim)
    p["patch_w"] = raw["patch_w"].reshape(hidden, -1).T.astype(jnp.bfloat16)
    blocks = []
    for b in raw["blocks"]:
        blocks.append(dict(
            ln1_g=b["ln1_g"], ln1_b=b["ln1_b"],
            w_qkv=jnp.concatenate([b["wq"] * scale, b["wk"], b["wv"]],
                                  axis=1).astype(jnp.bfloat16),
            b_qkv=jnp.concatenate([b["bq"] * scale, b["bk"], b["bv"]]),
            wo=b["wo"].astype(jnp.bfloat16), bo=b["bo"],
            ln2_g=b["ln2_g"], ln2_b=b["ln2_b"],
            w1=b["w1"].astype(jnp.bfloat16), b1=b["b1"],
            w2=b["w2"].astype(jnp.bfloat16), b2=b["b2"],
        ))
    p["blocks"] = blocks
    return p


# ----------------------------- main -----------------------------

if __name__ == "__main__":
    # Small config consistent with the module structure.
    B, C, IMG, PATCH = 2, 3, 16, 8
    HIDDEN, HEADS, MLP_DIM, LAYERS, TOKENS = 32, 4, 128, 3, 4
    Hp = Wp = IMG // PATCH

    key = jax.random.PRNGKey(0)
    kx, kp = jax.random.split(key)
    x = jax.random.normal(kx, (B, C, IMG, IMG), dtype=jnp.float32)

    raw_params = init_params(kp, in_channels=C, patch_size=(PATCH, PATCH),
                             hidden=HIDDEN, mlp_dim=MLP_DIM, num_layers=LAYERS,
                             num_tokens=TOKENS, n_patches=Hp * Wp)
    params = prepare_params(raw_params, HEADS)

    fwd = functools.partial(prompted_vit_forward,
                            patch_size=(PATCH, PATCH), img_size=(IMG, IMG),
                            num_heads=HEADS, num_layers=LAYERS,
                            num_tokens=TOKENS, norm=True)
    outs = jax.jit(fwd)(x, params)

    visual_embedding = outs[0][0]
    global_embedding = outs[1]
    jax.block_until_ready(visual_embedding)
    jax.block_until_ready(global_embedding)

    assert visual_embedding.shape == (B, HIDDEN, Hp, Wp)
    assert global_embedding.shape == (B, HIDDEN)
    assert bool(jnp.all(jnp.isfinite(visual_embedding)))
    assert bool(jnp.all(jnp.isfinite(global_embedding)))
    print("KERNEL_OK")
</pallas_src>

<mosaic_0001>
module attributes {stable_mosaic.version = 11 : i64} {
  func.func @_patch_embed_kernel(%arg0: i32, %arg1: memref<1x4x192xf32, #tpu.memory_space<vmem>>, %arg2: memref<192x32xbf16, #tpu.memory_space<vmem>>, %arg3: memref<1x32xf32, #tpu.memory_space<vmem>>, %arg4: memref<1x4x32xf32, #tpu.memory_space<vmem>>) attributes {dimension_semantics = [#tpu.dimension_semantics<parallel>], iteration_bounds = array<i64: 2>, scalar_prefetch = 0 : i64, scratch_operands = 0 : i64, tpu.core_type = #tpu.core_type<tc>, window_params = [{transform_indices = @transform_0, window_bounds = array<i64: 1, 4, 192>}, {pipeline_mode = #tpu.pipeline_mode<synchronous>, transform_indices = @transform_1, window_bounds = array<i64: 192, 32>}, {pipeline_mode = #tpu.pipeline_mode<synchronous>, transform_indices = @transform_2, window_bounds = array<i64: 1, 32>}, {transform_indices = @transform_3, window_bounds = array<i64: 1, 4, 32>}]} {
    %c0 = arith.constant 0 : index
    %c0_0 = arith.constant 0 : index
    %c0_1 = arith.constant 0 : index
    %0 = vector.load %arg1[%c0, %c0_0, %c0_1] : memref<1x4x192xf32, #tpu.memory_space<vmem>>, vector<1x4x192xf32>
    %1 = vector.shape_cast %0 : vector<1x4x192xf32> to vector<4x192xf32>
    %2 = arith.truncf %1 : vector<4x192xf32> to vector<4x192xbf16>
    %c0_2 = arith.constant 0 : index
    %c0_3 = arith.constant 0 : index
    %3 = vector.load %arg2[%c0_2, %c0_3] : memref<192x32xbf16, #tpu.memory_space<vmem>>, vector<192x32xbf16>
    %cst = arith.constant dense<0.000000e+00> : vector<4x32xf32>
    %4 = tpu.matmul %2, %3, %cst {dimension_numbers = #tpu.dot_dimension_numbers<[1], [0], [0], [1], [0, 0, 1, 1], [], []>} : vector<4x192xbf16>, vector<192x32xbf16>, vector<4x32xf32> -> vector<4x32xf32>
    %c0_4 = arith.constant 0 : index
    %c0_5 = arith.constant 0 : index
    %5 = vector.load %arg3[%c0_4, %c0_5] : memref<1x32xf32, #tpu.memory_space<vmem>>, vector<1x32xf32>
    %6 = vector.broadcast %5 : vector<1x32xf32> to vector<4x32xf32>
    %7 = arith.addf %4, %6 : vector<4x32xf32>
    %c0_6 = arith.constant 0 : index
    %c0_7 = arith.constant 0 : index
    %c0_8 = arith.constant 0 : index
    %8 = vector.load %arg4[%c0_6, %c0_7, %c0_8] : memref<1x4x32xf32, #tpu.memory_space<vmem>>, vector<1x4x32xf32>
    %9 = vector.shape_cast %8 : vector<1x4x32xf32> to vector<4x32xf32>
    %10 = vector.shape_cast %7 : vector<4x32xf32> to vector<1x4x32xf32>
    tpu.vector_store %arg4[%c0_6, %c0_7, %c0_8], %10 {strides = array<i32>} : memref<1x4x32xf32, #tpu.memory_space<vmem>>, vector<1x4x32xf32>,
    return
  }
  func.func @transform_0(%arg0: i32) -> (i32, i32, i32) {
    %c0_i32 = arith.constant 0 : i32
    %c0_i32_0 = arith.constant 0 : i32
    %c0_i32_1 = arith.constant 0 : i32
    return %arg0, %c0_i32, %c0_i32_0 : i32, i32, i32
  }
  func.func @transform_1(%arg0: i32) -> (i32, i32) {
    %c0_i32 = arith.constant 0 : i32
    %c0_i32_0 = arith.constant 0 : i32
    %c0_i32_1 = arith.constant 0 : i32
    return %c0_i32, %c0_i32_0 : i32, i32
  }
  func.func @transform_2(%arg0: i32) -> (i32, i32) {
    %c0_i32 = arith.constant 0 : i32
    %c0_i32_0 = arith.constant 0 : i32
    %c0_i32_1 = arith.constant 0 : i32
    return %c0_i32, %c0_i32_0 : i32, i32
  }
  func.func @transform_3(%arg0: i32) -> (i32, i32, i32) {
    %c0_i32 = arith.constant 0 : i32
    %c0_i32_0 = arith.constant 0 : i32
    %c0_i32_1 = arith.constant 0 : i32
    return %arg0, %c0_i32, %c0_i32_0 : i32, i32, i32
  }
}

module attributes {stable_mosaic.version = 11 : i64} {
  func.func @_mlp_block_kernel(%arg0: i32, %arg1: memref<1x9x32xf32, #tpu.memory_space<vmem>>, %arg2: memref<1x32xf32, #tpu.memory_space<vmem>>, %arg3: memref<1x32xf32, #tpu.memory_space<vmem>>, %arg4: memref<32x128xbf16, #tpu.memory_space<vmem>>, %arg5: memref<1x128xf32, #tpu.memory_space<vmem>>, %arg6: memref<128x32xbf16, #tpu.memory_space<vmem>>, %arg7: memref<1x32xf32, #tpu.memory_space<vmem>>, %arg8: memref<1x9x32xf32, #tpu.memory_space<vmem>>) attributes {dimension_semantics = [#tpu.dimension_semantics<parallel>], iteration_bounds = array<i64: 2>, scalar_prefetch = 0 : i64, scratch_operands = 0 : i64, tpu.core_type = #tpu.core_type<tc>, window_params = [{transform_indices = @transform_0, window_bounds = array<i64: 1, 9, 32>}, {pipeline_mode = #tpu.pipeline_mode<synchronous>, transform_indices = @transform_1, window_bounds = array<i64: 1, 32>}, {pipeline_mode = #tpu.pipeline_mode<synchronous>, transform_indices = @transform_2, window_bounds = array<i64: 1, 32>}, {pipeline_mode = #tpu.pipeline_mode<synchronous>, transform_indices = @transform_3, window_bounds = array<i64: 32, 128>}, {pipeline_mode = #tpu.pipeline_mode<synchronous>, transform_indices = @transform_4, window_bounds = array<i64: 1, 128>}, {pipeline_mode = #tpu.pipeline_mode<synchronous>, transform_indices = @transform_5, window_bounds = array<i64: 128, 32>}, {pipeline_mode = #tpu.pipeline_mode<synchronous>, transform_indices = @transform_6, window_bounds = array<i64: 1, 32>}, {transform_indices = @transform_7, window_bounds = array<i64: 1, 9, 32>}]} {
    %c0 = arith.constant 0 : index
    %c0_0 = arith.constant 0 : index
    %c0_1 = arith.constant 0 : index
    %0 = vector.load %arg1[%c0, %c0_0, %c0_1] : memref<1x9x32xf32, #tpu.memory_space<vmem>>, vector<1x9x32xf32>
    %1 = vector.shape_cast %0 : vector<1x9x32xf32> to vector<9x32xf32>
    %c0_2 = arith.constant 0 : index
    %c0_3 = arith.constant 0 : index
    %2 = vector.load %arg2[%c0_2, %c0_3] : memref<1x32xf32, #tpu.memory_space<vmem>>, vector<1x32xf32>
    %c0_4 = arith.constant 0 : index
    %c0_5 = arith.constant 0 : index
    %3 = vector.load %arg3[%c0_4, %c0_5] : memref<1x32xf32, #tpu.memory_space<vmem>>, vector<1x32xf32>
    %cst = arith.constant dense<0.000000e+00> : vector<9xf32>
    %4 = vector.multi_reduction <add>, %1, %cst [1] : vector<9x32xf32> to vector<9xf32>
    %5 = vector.shape_cast %4 : vector<9xf32> to vector<9x1xf32>
    %cst_6 = arith.constant 3.200000e+01 : f32
    %6 = vector.broadcast %cst_6 : f32 to vector<9x1xf32>
    %7 = arith.divf %5, %6 : vector<9x1xf32>
    %8 = vector.broadcast %7 : vector<9x1xf32> to vector<9x32xf32>
    %9 = arith.subf %1, %8 : vector<9x32xf32>
    %10 = arith.mulf %9, %9 : vector<9x32xf32>
    %cst_7 = arith.constant dense<0.000000e+00> : vector<9xf32>
    %11 = vector.multi_reduction <add>, %10, %cst_7 [1] : vector<9x32xf32> to vector<9xf32>
    %12 = vector.shape_cast %11 : vector<9xf32> to vector<9x1xf32>
    %cst_8 = arith.constant 3.200000e+01 : f32
    %13 = vector.broadcast %cst_8 : f32 to vector<9x1xf32>
    %14 = arith.divf %12, %13 : vector<9x1xf32>
    %cst_9 = arith.constant 9.99999997E-7 : f32
    %15 = vector.broadcast %cst_9 : f32 to vector<9x1xf32>
    %16 = arith.addf %14, %15 : vector<9x1xf32>
    %17 = math.rsqrt %16 : vector<9x1xf32>
    %18 = vector.broadcast %17 : vector<9x1xf32> to vector<9x32xf32>
    %19 = arith.mulf %9, %18 : vector<9x32xf32>
    %20 = vector.broadcast %2 : vector<1x32xf32> to vector<9x32xf32>
    %21 = arith.mulf %19, %20 : vector<9x32xf32>
    %22 = vector.broadcast %3 : vector<1x32xf32> to vector<9x32xf32>
    %23 = arith.addf %21, %22 : vector<9x32xf32>
    %24 = arith.truncf %23 : vector<9x32xf32> to vector<9x32xbf16>
    %c0_10 = arith.constant 0 : index
    %c0_11 = arith.constant 0 : index
    %25 = vector.load %arg4[%c0_10, %c0_11] : memref<32x128xbf16, #tpu.memory_space<vmem>>, vector<32x128xbf16>
    %cst_12 = arith.constant dense<0.000000e+00> : vector<9x128xf32>
    %26 = tpu.matmul %24, %25, %cst_12 {dimension_numbers = #tpu.dot_dimension_numbers<[1], [0], [0], [1], [0, 0, 1, 1], [], []>} : vector<9x32xbf16>, vector<32x128xbf16>, vector<9x128xf32> -> vector<9x128xf32>
    %c0_13 = arith.constant 0 : index
    %c0_14 = arith.constant 0 : index
    %27 = vector.load %arg5[%c0_13, %c0_14] : memref<1x128xf32, #tpu.memory_space<vmem>>, vector<1x128xf32>
    %28 = vector.broadcast %27 : vector<1x128xf32> to vector<9x128xf32>
    %29 = arith.addf %26, %28 : vector<9x128xf32>
    %cst_15 = arith.constant 5.000000e-01 : f32
    %30 = vector.broadcast %cst_15 : f32 to vector<9x128xf32>
    %31 = arith.mulf %30, %29 : vector<9x128xf32>
    %cst_16 = arith.constant 4.471500e-02 : f32
    %32 = vector.broadcast %cst_16 : f32 to vector<9x128xf32>
    %33 = arith.mulf %32, %29 : vector<9x128xf32>
    %34 = arith.mulf %33, %29 : vector<9x128xf32>
    %35 = arith.mulf %34, %29 : vector<9x128xf32>
    %36 = arith.addf %29, %35 : vector<9x128xf32>
    %cst_17 = arith.constant 0.797884583 : f32
    %37 = vector.broadcast %cst_17 : f32 to vector<9x128xf32>
    %38 = arith.mulf %37, %36 : vector<9x128xf32>
    %39 = math.tanh %38 : vector<9x128xf32>
    %cst_18 = arith.constant 1.000000e+00 : f32
    %40 = vector.broadcast %cst_18 : f32 to vector<9x128xf32>
    %41 = arith.addf %40, %39 : vector<9x128xf32>
    %42 = arith.mulf %31, %41 : vector<9x128xf32>
    %43 = arith.truncf %42 : vector<9x128xf32> to vector<9x128xbf16>
    %c0_19 = arith.constant 0 : index
    %c0_20 = arith.constant 0 : index
    %44 = vector.load %arg6[%c0_19, %c0_20] : memref<128x32xbf16, #tpu.memory_space<vmem>>, vector<128x32xbf16>
    %cst_21 = arith.constant dense<0.000000e+00> : vector<9x32xf32>
    %45 = tpu.matmul %43, %44, %cst_21 {dimension_numbers = #tpu.dot_dimension_numbers<[1], [0], [0], [1], [0, 0, 1, 1], [], []>} : vector<9x128xbf16>, vector<128x32xbf16>, vector<9x32xf32> -> vector<9x32xf32>
    %c0_22 = arith.constant 0 : index
    %c0_23 = arith.constant 0 : index
    %46 = vector.load %arg7[%c0_22, %c0_23] : memref<1x32xf32, #tpu.memory_space<vmem>>, vector<1x32xf32>
    %47 = vector.broadcast %46 : vector<1x32xf32> to vector<9x32xf32>
    %48 = arith.addf %45, %47 : vector<9x32xf32>
    %49 = arith.addf %1, %48 : vector<9x32xf32>
    %c0_24 = arith.constant 0 : index
    %c0_25 = arith.constant 0 : index
    %c0_26 = arith.constant 0 : index
    %50 = vector.load %arg8[%c0_24, %c0_25, %c0_26] : memref<1x9x32xf32, #tpu.memory_space<vmem>>, vector<1x9x32xf32>
    %51 = vector.shape_cast %50 : vector<1x9x32xf32> to vector<9x32xf32>
    %52 = vector.shape_cast %49 : vector<9x32xf32> to vector<1x9x32xf32>
    tpu.vector_store %arg8[%c0_24, %c0_25, %c0_26], %52 {strides = array<i32>} : memref<1x9x32xf32, #tpu.memory_space<vmem>>, vector<1x9x32xf32>,
    return
  }
  func.func @transform_0(%arg0: i32) -> (i32, i32, i32) {
    %c0_i32 = arith.constant 0 : i32
    %c0_i32_0 = arith.constant 0 : i32
    %c0_i32_1 = arith.constant 0 : i32
    return %arg0, %c0_i32, %c0_i32_0 : i32, i32, i32
  }
  func.func @transform_1(%arg0: i32) -> (i32, i32) {
    %c0_i32 = arith.constant 0 : i32
    %c0_i32_0 = arith.constant 0 : i32
    %c0_i32_1 = arith.constant 0 : i32
    return %c0_i32, %c0_i32_0 : i32, i32
  }
  func.func @transform_2(%arg0: i32) -> (i32, i32) {
    %c0_i32 = arith.constant 0 : i32
    %c0_i32_0 = arith.constant 0 : i32
    %c0_i32_1 = arith.constant 0 : i32
    return %c0_i32, %c0_i32_0 : i32, i32
  }
  func.func @transform_3(%arg0: i32) -> (i32, i32) {
    %c0_i32 = arith.constant 0 : i32
    %c0_i32_0 = arith.constant 0 : i32
    %c0_i32_1 = arith.constant 0 : i32
    return %c0_i32, %c0_i32_0 : i32, i32
  }
  func.func @transform_4(%arg0: i32) -> (i32, i32) {
    %c0_i32 = arith.constant 0 : i32
    %c0_i32_0 = arith.constant 0 : i32
    %c0_i32_1 = arith.constant 0 : i32
    return %c0_i32, %c0_i32_0 : i32, i32
  }
  func.func @transform_5(%arg0: i32) -> (i32, i32) {
    %c0_i32 = arith.constant 0 : i32
    %c0_i32_0 = arith.constant 0 : i32
    %c0_i32_1 = arith.constant 0 : i32
    return %c0_i32, %c0_i32_0 : i32, i32
  }
  func.func @transform_6(%arg0: i32) -> (i32, i32) {
    %c0_i32 = arith.constant 0 : i32
    %c0_i32_0 = arith.constant 0 : i32
    %c0_i32_1 = arith.constant 0 : i32
    return %c0_i32, %c0_i32_0 : i32, i32
  }
  func.func @transform_7(%arg0: i32) -> (i32, i32, i32) {
    %c0_i32 = arith.constant 0 : i32
    %c0_i32_0 = arith.constant 0 : i32
    %c0_i32_1 = arith.constant 0 : i32
    return %arg0, %c0_i32, %c0_i32_0 : i32, i32, i32
  }
}

module attributes {stable_mosaic.version = 11 : i64} {
  func.func @_attn_block_kernel(%arg0: i32, %arg1: memref<1x9x32xf32, #tpu.memory_space<vmem>>, %arg2: memref<1x32xf32, #tpu.memory_space<vmem>>, %arg3: memref<1x32xf32, #tpu.memory_space<vmem>>, %arg4: memref<32x96xbf16, #tpu.memory_space<vmem>>, %arg5: memref<1x96xf32, #tpu.memory_space<vmem>>, %arg6: memref<32x32xbf16, #tpu.memory_space<vmem>>, %arg7: memref<1x32xf32, #tpu.memory_space<vmem>>, %arg8: memref<1x9x32xf32, #tpu.memory_space<vmem>>, %arg9: memref<9x96xbf16, #tpu.memory_space<vmem>>) attributes {dimension_semantics = [#tpu.dimension_semantics<parallel>], iteration_bounds = array<i64: 2>, scalar_prefetch = 0 : i64, scratch_operands = 1 : i64, tpu.core_type = #tpu.core_type<tc>, window_params = [{transform_indices = @transform_0, window_bounds = array<i64: 1, 9, 32>}, {pipeline_mode = #tpu.pipeline_mode<synchronous>, transform_indices = @transform_1, window_bounds = array<i64: 1, 32>}, {pipeline_mode = #tpu.pipeline_mode<synchronous>, transform_indices = @transform_2, window_bounds = array<i64: 1, 32>}, {pipeline_mode = #tpu.pipeline_mode<synchronous>, transform_indices = @transform_3, window_bounds = array<i64: 32, 96>}, {pipeline_mode = #tpu.pipeline_mode<synchronous>, transform_indices = @transform_4, window_bounds = array<i64: 1, 96>}, {pipeline_mode = #tpu.pipeline_mode<synchronous>, transform_indices = @transform_5, window_bounds = array<i64: 32, 32>}, {pipeline_mode = #tpu.pipeline_mode<synchronous>, transform_indices = @transform_6, window_bounds = array<i64: 1, 32>}, {transform_indices = @transform_7, window_bounds = array<i64: 1, 9, 32>}]} {
    %c0 = arith.constant 0 : index
    %c0_0 = arith.constant 0 : index
    %c0_1 = arith.constant 0 : index
    %0 = vector.load %arg1[%c0, %c0_0, %c0_1] : memref<1x9x32xf32, #tpu.memory_space<vmem>>, vector<1x9x32xf32>
    %1 = vector.shape_cast %0 : vector<1x9x32xf32> to vector<9x32xf32>
    %c0_2 = arith.constant 0 : index
    %c0_3 = arith.constant 0 : index
    %2 = vector.load %arg2[%c0_2, %c0_3] : memref<1x32xf32, #tpu.memory_space<vmem>>, vector<1x32xf32>
    %c0_4 = arith.constant 0 : index
    %c0_5 = arith.constant 0 : index
    %3 = vector.load %arg3[%c0_4, %c0_5] : memref<1x32xf32, #tpu.memory_space<vmem>>, vector<1x32xf32>
    %cst = arith.constant dense<0.000000e+00> : vector<9xf32>
    %4 = vector.multi_reduction <add>, %1, %cst [1] : vector<9x32xf32> to vector<9xf32>
    %5 = vector.shape_cast %4 : vector<9xf32> to vector<9x1xf32>
    %cst_6 = arith.constant 3.200000e+01 : f32
    %6 = vector.broadcast %cst_6 : f32 to vector<9x1xf32>
    %7 = arith.divf %5, %6 : vector<9x1xf32>
    %8 = vector.broadcast %7 : vector<9x1xf32> to vector<9x32xf32>
    %9 = arith.subf %1, %8 : vector<9x32xf32>
    %10 = arith.mulf %9, %9 : vector<9x32xf32>
    %cst_7 = arith.constant dense<0.000000e+00> : vector<9xf32>
    %11 = vector.multi_reduction <add>, %10, %cst_7 [1] : vector<9x32xf32> to vector<9xf32>
    %12 = vector.shape_cast %11 : vector<9xf32> to vector<9x1xf32>
    %cst_8 = arith.constant 3.200000e+01 : f32
    %13 = vector.broadcast %cst_8 : f32 to vector<9x1xf32>
    %14 = arith.divf %12, %13 : vector<9x1xf32>
    %cst_9 = arith.constant 9.99999997E-7 : f32
    %15 = vector.broadcast %cst_9 : f32 to vector<9x1xf32>
    %16 = arith.addf %14, %15 : vector<9x1xf32>
    %17 = math.rsqrt %16 : vector<9x1xf32>
    %18 = vector.broadcast %17 : vector<9x1xf32> to vector<9x32xf32>
    %19 = arith.mulf %9, %18 : vector<9x32xf32>
    %20 = vector.broadcast %2 : vector<1x32xf32> to vector<9x32xf32>
    %21 = arith.mulf %19, %20 : vector<9x32xf32>
    %22 = vector.broadcast %3 : vector<1x32xf32> to vector<9x32xf32>
    %23 = arith.addf %21, %22 : vector<9x32xf32>
    %24 = arith.truncf %23 : vector<9x32xf32> to vector<9x32xbf16>
    %c0_10 = arith.constant 0 : index
    %c0_11 = arith.constant 0 : index
    %25 = vector.load %arg4[%c0_10, %c0_11] : memref<32x96xbf16, #tpu.memory_space<vmem>>, vector<32x96xbf16>
    %cst_12 = arith.constant dense<0.000000e+00> : vector<9x96xf32>
    %26 = tpu.matmul %24, %25, %cst_12 {dimension_numbers = #tpu.dot_dimension_numbers<[1], [0], [0], [1], [0, 0, 1, 1], [], []>} : vector<9x32xbf16>, vector<32x96xbf16>, vector<9x96xf32> -> vector<9x96xf32>
    %c0_13 = arith.constant 0 : index
    %c0_14 = arith.constant 0 : index
    %27 = vector.load %arg5[%c0_13, %c0_14] : memref<1x96xf32, #tpu.memory_space<vmem>>, vector<1x96xf32>
    %28 = vector.broadcast %27 : vector<1x96xf32> to vector<9x96xf32>
    %29 = arith.addf %26, %28 : vector<9x96xf32>
    %30 = arith.truncf %29 : vector<9x96xf32> to vector<9x96xbf16>
    %c0_15 = arith.constant 0 : index
    %c0_16 = arith.constant 0 : index
    %31 = vector.load %arg9[%c0_15, %c0_16] : memref<9x96xbf16, #tpu.memory_space<vmem>>, vector<9x96xbf16>
    tpu.vector_store %arg9[%c0_15, %c0_16], %30 {strides = array<i32>} : memref<9x96xbf16, #tpu.memory_space<vmem>>, vector<9x96xbf16>,
    %c0_17 = arith.constant 0 : index
    %c0_18 = arith.constant 0 : index
    %32 = vector.load %arg7[%c0_17, %c0_18] : memref<1x32xf32, #tpu.memory_space<vmem>>, vector<1x32xf32>
    %33 = vector.broadcast %32 : vector<1x32xf32> to vector<9x32xf32>
    %34 = arith.addf %1, %33 : vector<9x32xf32>
    %c0_19 = arith.constant 0 : index
    %c0_20 = arith.constant 0 : index
    %35 = vector.load %arg9[%c0_19, %c0_20] : memref<9x96xbf16, #tpu.memory_space<vmem>>, vector<9x8xbf16>
    %c0_21 = arith.constant 0 : index
    %c32 = arith.constant 32 : index
    %36 = vector.load %arg9[%c0_21, %c32] : memref<9x96xbf16, #tpu.memory_space<vmem>>, vector<9x8xbf16>
    %c0_22 = arith.constant 0 : index
    %c64 = arith.constant 64 : index
    %37 = vector.load %arg9[%c0_22, %c64] : memref<9x96xbf16, #tpu.memory_space<vmem>>, vector<9x8xbf16>
    %cst_23 = arith.constant dense<0.000000e+00> : vector<9x9xf32>
    %38 = tpu.matmul %35, %36, %cst_23 {dimension_numbers = #tpu.dot_dimension_numbers<[1], [1], [0], [0], [0, 0, 1, 0], [], []>} : vector<9x8xbf16>, vector<9x8xbf16>, vector<9x9xf32> -> vector<9x9xf32>
    %cst_24 = arith.constant dense<0xFF800000> : vector<9xf32>
    %39 = vector.multi_reduction <maximumf>, %38, %cst_24 [1] : vector<9x9xf32> to vector<9xf32>
    %40 = vector.shape_cast %39 : vector<9xf32> to vector<9x1xf32>
    %41 = vector.broadcast %40 : vector<9x1xf32> to vector<9x9xf32>
    %42 = arith.subf %38, %41 : vector<9x9xf32>
    %43 = math.exp %42 : vector<9x9xf32>
    %cst_25 = arith.constant dense<0.000000e+00> : vector<9xf32>
    %44 = vector.multi_reduction <add>, %43, %cst_25 [1] : vector<9x9xf32> to vector<9xf32>
    %45 = vector.shape_cast %44 : vector<9xf32> to vector<9x1xf32>
    %46 = tpu.reciprocal %45 {approx = true} : vector<9x1xf32> -> vector<9x1xf32>
    %47 = vector.broadcast %46 : vector<9x1xf32> to vector<9x9xf32>
    %48 = arith.mulf %43, %47 : vector<9x9xf32>
    %49 = arith.truncf %48 : vector<9x9xf32> to vector<9x9xbf16>
    %cst_26 = arith.constant dense<0.000000e+00> : vector<9x8xf32>
    %50 = tpu.matmul %49, %37, %cst_26 {dimension_numbers = #tpu.dot_dimension_numbers<[1], [0], [0], [1], [0, 0, 1, 1], [], []>} : vector<9x9xbf16>, vector<9x8xbf16>, vector<9x8xf32> -> vector<9x8xf32>
    %51 = arith.truncf %50 : vector<9x8xf32> to vector<9x8xbf16>
    %c0_27 = arith.constant 0 : index
    %c0_28 = arith.constant 0 : index
    %52 = vector.load %arg6[%c0_27, %c0_28] : memref<32x32xbf16, #tpu.memory_space<vmem>>, vector<8x32xbf16>
    %cst_29 = arith.constant dense<0.000000e+00> : vector<9x32xf32>
    %53 = tpu.matmul %51, %52, %cst_29 {dimension_numbers = #tpu.dot_dimension_numbers<[1], [0], [0], [1], [0, 0, 1, 1], [], []>} : vector<9x8xbf16>, vector<8x32xbf16>, vector<9x32xf32> -> vector<9x32xf32>
    %54 = arith.addf %34, %53 : vector<9x32xf32>
    %c0_30 = arith.constant 0 : index
    %c8 = arith.constant 8 : index
    %55 = vector.load %arg9[%c0_30, %c8] : memref<9x96xbf16, #tpu.memory_space<vmem>>, vector<9x8xbf16>
    %c0_31 = arith.constant 0 : index
    %c40 = arith.constant 40 : index
    %56 = vector.load %arg9[%c0_31, %c40] : memref<9x96xbf16, #tpu.memory_space<vmem>>, vector<9x8xbf16>
    %c0_32 = arith.constant 0 : index
    %c72 = arith.constant 72 : index
    %57 = vector.load %arg9[%c0_32, %c72] : memref<9x96xbf16, #tpu.memory_space<vmem>>, vector<9x8xbf16>
    %cst_33 = arith.constant dense<0.000000e+00> : vector<9x9xf32>
    %58 = tpu.matmul %55, %56, %cst_33 {dimension_numbers = #tpu.dot_dimension_numbers<[1], [1], [0], [0], [0, 0, 1, 0], [], []>} : vector<9x8xbf16>, vector<9x8xbf16>, vector<9x9xf32> -> vector<9x9xf32>
    %cst_34 = arith.constant dense<0xFF800000> : vector<9xf32>
    %59 = vector.multi_reduction <maximumf>, %58, %cst_34 [1] : vector<9x9xf32> to vector<9xf32>
    %60 = vector.shape_cast %59 : vector<9xf32> to vector<9x1xf32>
    %61 = vector.broadcast %60 : vector<9x1xf32> to vector<9x9xf32>
    %62 = arith.subf %58, %61 : vector<9x9xf32>
    %63 = math.exp %62 : vector<9x9xf32>
    %cst_35 = arith.constant dense<0.000000e+00> : vector<9xf32>
    %64 = vector.multi_reduction <add>, %63, %cst_35 [1] : vector<9x9xf32> to vector<9xf32>
    %65 = vector.shape_cast %64 : vector<9xf32> to vector<9x1xf32>
    %66 = tpu.reciprocal %65 {approx = true} : vector<9x1xf32> -> vector<9x1xf32>
    %67 = vector.broadcast %66 : vector<9x1xf32> to vector<9x9xf32>
    %68 = arith.mulf %63, %67 : vector<9x9xf32>
    %69 = arith.truncf %68 : vector<9x9xf32> to vector<9x9xbf16>
    %cst_36 = arith.constant dense<0.000000e+00> : vector<9x8xf32>
    %70 = tpu.matmul %69, %57, %cst_36 {dimension_numbers = #tpu.dot_dimension_numbers<[1], [0], [0], [1], [0, 0, 1, 1], [], []>} : vector<9x9xbf16>, vector<9x8xbf16>, vector<9x8xf32> -> vector<9x8xf32>
    %71 = arith.truncf %70 : vector<9x8xf32> to vector<9x8xbf16>
    %c8_37 = arith.constant 8 : index
    %c0_38 = arith.constant 0 : index
    %72 = vector.load %arg6[%c8_37, %c0_38] : memref<32x32xbf16, #tpu.memory_space<vmem>>, vector<8x32xbf16>
    %cst_39 = arith.constant dense<0.000000e+00> : vector<9x32xf32>
    %73 = tpu.matmul %71, %72, %cst_39 {dimension_numbers = #tpu.dot_dimension_numbers<[1], [0], [0], [1], [0, 0, 1, 1], [], []>} : vector<9x8xbf16>, vector<8x32xbf16>, vector<9x32xf32> -> vector<9x32xf32>
    %74 = arith.addf %54, %73 : vector<9x32xf32>
    %c0_40 = arith.constant 0 : index
    %c16 = arith.constant 16 : index
    %75 = vector.load %arg9[%c0_40, %c16] : memref<9x96xbf16, #tpu.memory_space<vmem>>, vector<9x8xbf16>
    %c0_41 = arith.constant 0 : index
    %c48 = arith.constant 48 : index
    %76 = vector.load %arg9[%c0_41, %c48] : memref<9x96xbf16, #tpu.memory_space<vmem>>, vector<9x8xbf16>
    %c0_42 = arith.constant 0 : index
    %c80 = arith.constant 80 : index
    %77 = vector.load %arg9[%c0_42, %c80] : memref<9x96xbf16, #tpu.memory_space<vmem>>, vector<9x8xbf16>
    %cst_43 = arith.constant dense<0.000000e+00> : vector<9x9xf32>
    %78 = tpu.matmul %75, %76, %cst_43 {dimension_numbers = #tpu.dot_dimension_numbers<[1], [1], [0], [0], [0, 0, 1, 0], [], []>} : vector<9x8xbf16>, vector<9x8xbf16>, vector<9x9xf32> -> vector<9x9xf32>
    %cst_44 = arith.constant dense<0xFF800000> : vector<9xf32>
    %79 = vector.multi_reduction <maximumf>, %78, %cst_44 [1] : vector<9x9xf32> to vector<9xf32>
    %80 = vector.shape_cast %79 : vector<9xf32> to vector<9x1xf32>
    %81 = vector.broadcast %80 : vector<9x1xf32> to vector<9x9xf32>
    %82 = arith.subf %78, %81 : vector<9x9xf32>
    %83 = math.exp %82 : vector<9x9xf32>
    %cst_45 = arith.constant dense<0.000000e+00> : vector<9xf32>
    %84 = vector.multi_reduction <add>, %83, %cst_45 [1] : vector<9x9xf32> to vector<9xf32>
    %85 = vector.shape_cast %84 : vector<9xf32> to vector<9x1xf32>
    %86 = tpu.reciprocal %85 {approx = true} : vector<9x1xf32> -> vector<9x1xf32>
    %87 = vector.broadcast %86 : vector<9x1xf32> to vector<9x9xf32>
    %88 = arith.mulf %83, %87 : vector<9x9xf32>
    %89 = arith.truncf %88 : vector<9x9xf32> to vector<9x9xbf16>
    %cst_46 = arith.constant dense<0.000000e+00> : vector<9x8xf32>
    %90 = tpu.matmul %89, %77, %cst_46 {dimension_numbers = #tpu.dot_dimension_numbers<[1], [0], [0], [1], [0, 0, 1, 1], [], []>} : vector<9x9xbf16>, vector<9x8xbf16>, vector<9x8xf32> -> vector<9x8xf32>
    %91 = arith.truncf %90 : vector<9x8xf32> to vector<9x8xbf16>
    %c16_47 = arith.constant 16 : index
    %c0_48 = arith.constant 0 : index
    %92 = vector.load %arg6[%c16_47, %c0_48] : memref<32x32xbf16, #tpu.memory_space<vmem>>, vector<8x32xbf16>
    %cst_49 = arith.constant dense<0.000000e+00> : vector<9x32xf32>
    %93 = tpu.matmul %91, %92, %cst_49 {dimension_numbers = #tpu.dot_dimension_numbers<[1], [0], [0], [1], [0, 0, 1, 1], [], []>} : vector<9x8xbf16>, vector<8x32xbf16>, vector<9x32xf32> -> vector<9x32xf32>
    %94 = arith.addf %74, %93 : vector<9x32xf32>
    %c0_50 = arith.constant 0 : index
    %c24 = arith.constant 24 : index
    %95 = vector.load %arg9[%c0_50, %c24] : memref<9x96xbf16, #tpu.memory_space<vmem>>, vector<9x8xbf16>
    %c0_51 = arith.constant 0 : index
    %c56 = arith.constant 56 : index
    %96 = vector.load %arg9[%c0_51, %c56] : memref<9x96xbf16, #tpu.memory_space<vmem>>, vector<9x8xbf16>
    %c0_52 = arith.constant 0 : index
    %c88 = arith.constant 88 : index
    %97 = vector.load %arg9[%c0_52, %c88] : memref<9x96xbf16, #tpu.memory_space<vmem>>, vector<9x8xbf16>
    %cst_53 = arith.constant dense<0.000000e+00> : vector<9x9xf32>
    %98 = tpu.matmul %95, %96, %cst_53 {dimension_numbers = #tpu.dot_dimension_numbers<[1], [1], [0], [0], [0, 0, 1, 0], [], []>} : vector<9x8xbf16>, vector<9x8xbf16>, vector<9x9xf32> -> vector<9x9xf32>
    %cst_54 = arith.constant dense<0xFF800000> : vector<9xf32>
    %99 = vector.multi_reduction <maximumf>, %98, %cst_54 [1] : vector<9x9xf32> to vector<9xf32>
    %100 = vector.shape_cast %99 : vector<9xf32> to vector<9x1xf32>
    %101 = vector.broadcast %100 : vector<9x1xf32> to vector<9x9xf32>
    %102 = arith.subf %98, %101 : vector<9x9xf32>
    %103 = math.exp %102 : vector<9x9xf32>
    %cst_55 = arith.constant dense<0.000000e+00> : vector<9xf32>
    %104 = vector.multi_reduction <add>, %103, %cst_55 [1] : vector<9x9xf32> to vector<9xf32>
    %105 = vector.shape_cast %104 : vector<9xf32> to vector<9x1xf32>
    %106 = tpu.reciprocal %105 {approx = true} : vector<9x1xf32> -> vector<9x1xf32>
    %107 = vector.broadcast %106 : vector<9x1xf32> to vector<9x9xf32>
    %108 = arith.mulf %103, %107 : vector<9x9xf32>
    %109 = arith.truncf %108 : vector<9x9xf32> to vector<9x9xbf16>
    %cst_56 = arith.constant dense<0.000000e+00> : vector<9x8xf32>
    %110 = tpu.matmul %109, %97, %cst_56 {dimension_numbers = #tpu.dot_dimension_numbers<[1], [0], [0], [1], [0, 0, 1, 1], [], []>} : vector<9x9xbf16>, vector<9x8xbf16>, vector<9x8xf32> -> vector<9x8xf32>
    %111 = arith.truncf %110 : vector<9x8xf32> to vector<9x8xbf16>
    %c24_57 = arith.constant 24 : index
    %c0_58 = arith.constant 0 : index
    %112 = vector.load %arg6[%c24_57, %c0_58] : memref<32x32xbf16, #tpu.memory_space<vmem>>, vector<8x32xbf16>
    %cst_59 = arith.constant dense<0.000000e+00> : vector<9x32xf32>
    %113 = tpu.matmul %111, %112, %cst_59 {dimension_numbers = #tpu.dot_dimension_numbers<[1], [0], [0], [1], [0, 0, 1, 1], [], []>} : vector<9x8xbf16>, vector<8x32xbf16>, vector<9x32xf32> -> vector<9x32xf32>
    %114 = arith.addf %94, %113 : vector<9x32xf32>
    %c0_60 = arith.constant 0 : index
    %c0_61 = arith.constant 0 : index
    %c0_62 = arith.constant 0 : index
    %115 = vector.load %arg8[%c0_60, %c0_61, %c0_62] : memref<1x9x32xf32, #tpu.memory_space<vmem>>, vector<1x9x32xf32>
    %116 = vector.shape_cast %115 : vector<1x9x32xf32> to vector<9x32xf32>
    %117 = vector.shape_cast %114 : vector<9x32xf32> to vector<1x9x32xf32>
    tpu.vector_store %arg8[%c0_60, %c0_61, %c0_62], %117 {strides = array<i32>} : memref<1x9x32xf32, #tpu.memory_space<vmem>>, vector<1x9x32xf32>,
    return
  }
  func.func @transform_0(%arg0: i32) -> (i32, i32, i32) {
    %c0_i32 = arith.constant 0 : i32
    %c0_i32_0 = arith.constant 0 : i32
    %c0_i32_1 = arith.constant 0 : i32
    return %arg0, %c0_i32, %c0_i32_0 : i32, i32, i32
  }
  func.func @transform_1(%arg0: i32) -> (i32, i32) {
    %c0_i32 = arith.constant 0 : i32
    %c0_i32_0 = arith.constant 0 : i32
    %c0_i32_1 = arith.constant 0 : i32
    return %c0_i32, %c0_i32_0 : i32, i32
  }
  func.func @transform_2(%arg0: i32) -> (i32, i32) {
    %c0_i32 = arith.constant 0 : i32
    %c0_i32_0 = arith.constant 0 : i32
    %c0_i32_1 = arith.constant 0 : i32
    return %c0_i32, %c0_i32_0 : i32, i32
  }
  func.func @transform_3(%arg0: i32) -> (i32, i32) {
    %c0_i32 = arith.constant 0 : i32
    %c0_i32_0 = arith.constant 0 : i32
    %c0_i32_1 = arith.constant 0 : i32
    return %c0_i32, %c0_i32_0 : i32, i32
  }
  func.func @transform_4(%arg0: i32) -> (i32, i32) {
    %c0_i32 = arith.constant 0 : i32
    %c0_i32_0 = arith.constant 0 : i32
    %c0_i32_1 = arith.constant 0 : i32
    return %c0_i32, %c0_i32_0 : i32, i32
  }
  func.func @transform_5(%arg0: i32) -> (i32, i32) {
    %c0_i32 = arith.constant 0 : i32
    %c0_i32_0 = arith.constant 0 : i32
    %c0_i32_1 = arith.constant 0 : i32
    return %c0_i32, %c0_i32_0 : i32, i32
  }
  func.func @transform_6(%arg0: i32) -> (i32, i32) {
    %c0_i32 = arith.constant 0 : i32
    %c0_i32_0 = arith.constant 0 : i32
    %c0_i32_1 = arith.constant 0 : i32
    return %c0_i32, %c0_i32_0 : i32, i32
  }
  func.func @transform_7(%arg0: i32) -> (i32, i32, i32) {
    %c0_i32 = arith.constant 0 : i32
    %c0_i32_0 = arith.constant 0 : i32
    %c0_i32_1 = arith.constant 0 : i32
    return %arg0, %c0_i32, %c0_i32_0 : i32, i32, i32
  }
}

module attributes {stable_mosaic.version = 11 : i64} {
  func.func @_layernorm3_kernel(%arg0: i32, %arg1: memref<1x9x32xf32, #tpu.memory_space<vmem>>, %arg2: memref<1x32xf32, #tpu.memory_space<vmem>>, %arg3: memref<1x32xf32, #tpu.memory_space<vmem>>, %arg4: memref<1x9x32xf32, #tpu.memory_space<vmem>>) attributes {dimension_semantics = [#tpu.dimension_semantics<parallel>], iteration_bounds = array<i64: 2>, scalar_prefetch = 0 : i64, scratch_operands = 0 : i64, tpu.core_type = #tpu.core_type<tc>, window_params = [{transform_indices = @transform_0, window_bounds = array<i64: 1, 9, 32>}, {pipeline_mode = #tpu.pipeline_mode<synchronous>, transform_indices = @transform_1, window_bounds = array<i64: 1, 32>}, {pipeline_mode = #tpu.pipeline_mode<synchronous>, transform_indices = @transform_2, window_bounds = array<i64: 1, 32>}, {transform_indices = @transform_3, window_bounds = array<i64: 1, 9, 32>}]} {
    %c0 = arith.constant 0 : index
    %c0_0 = arith.constant 0 : index
    %c0_1 = arith.constant 0 : index
    %0 = vector.load %arg1[%c0, %c0_0, %c0_1] : memref<1x9x32xf32, #tpu.memory_space<vmem>>, vector<1x9x32xf32>
    %1 = vector.shape_cast %0 : vector<1x9x32xf32> to vector<9x32xf32>
    %c0_2 = arith.constant 0 : index
    %c0_3 = arith.constant 0 : index
    %2 = vector.load %arg2[%c0_2, %c0_3] : memref<1x32xf32, #tpu.memory_space<vmem>>, vector<1x32xf32>
    %c0_4 = arith.constant 0 : index
    %c0_5 = arith.constant 0 : index
    %3 = vector.load %arg3[%c0_4, %c0_5] : memref<1x32xf32, #tpu.memory_space<vmem>>, vector<1x32xf32>
    %cst = arith.constant dense<0.000000e+00> : vector<9xf32>
    %4 = vector.multi_reduction <add>, %1, %cst [1] : vector<9x32xf32> to vector<9xf32>
    %5 = vector.shape_cast %4 : vector<9xf32> to vector<9x1xf32>
    %cst_6 = arith.constant 3.200000e+01 : f32
    %6 = vector.broadcast %cst_6 : f32 to vector<9x1xf32>
    %7 = arith.divf %5, %6 : vector<9x1xf32>
    %8 = vector.broadcast %7 : vector<9x1xf32> to vector<9x32xf32>
    %9 = arith.subf %1, %8 : vector<9x32xf32>
    %10 = arith.mulf %9, %9 : vector<9x32xf32>
    %cst_7 = arith.constant dense<0.000000e+00> : vector<9xf32>
    %11 = vector.multi_reduction <add>, %10, %cst_7 [1] : vector<9x32xf32> to vector<9xf32>
    %12 = vector.shape_cast %11 : vector<9xf32> to vector<9x1xf32>
    %cst_8 = arith.constant 3.200000e+01 : f32
    %13 = vector.broadcast %cst_8 : f32 to vector<9x1xf32>
    %14 = arith.divf %12, %13 : vector<9x1xf32>
    %cst_9 = arith.constant 9.99999997E-7 : f32
    %15 = vector.broadcast %cst_9 : f32 to vector<9x1xf32>
    %16 = arith.addf %14, %15 : vector<9x1xf32>
    %17 = math.rsqrt %16 : vector<9x1xf32>
    %18 = vector.broadcast %17 : vector<9x1xf32> to vector<9x32xf32>
    %19 = arith.mulf %9, %18 : vector<9x32xf32>
    %20 = vector.broadcast %2 : vector<1x32xf32> to vector<9x32xf32>
    %21 = arith.mulf %19, %20 : vector<9x32xf32>
    %22 = vector.broadcast %3 : vector<1x32xf32> to vector<9x32xf32>
    %23 = arith.addf %21, %22 : vector<9x32xf32>
    %c0_10 = arith.constant 0 : index
    %c0_11 = arith.constant 0 : index
    %c0_12 = arith.constant 0 : index
    %24 = vector.load %arg4[%c0_10, %c0_11, %c0_12] : memref<1x9x32xf32, #tpu.memory_space<vmem>>, vector<1x9x32xf32>
    %25 = vector.shape_cast %24 : vector<1x9x32xf32> to vector<9x32xf32>
    %26 = vector.shape_cast %23 : vector<9x32xf32> to vector<1x9x32xf32>
    tpu.vector_store %arg4[%c0_10, %c0_11, %c0_12], %26 {strides = array<i32>} : memref<1x9x32xf32, #tpu.memory_space<vmem>>, vector<1x9x32xf32>,
    return
  }
  func.func @transform_0(%arg0: i32) -> (i32, i32, i32) {
    %c0_i32 = arith.constant 0 : i32
    %c0_i32_0 = arith.constant 0 : i32
    %c0_i32_1 = arith.constant 0 : i32
    return %arg0, %c0_i32, %c0_i32_0 : i32, i32, i32
  }
  func.func @transform_1(%arg0: i32) -> (i32, i32) {
    %c0_i32 = arith.constant 0 : i32
    %c0_i32_0 = arith.constant 0 : i32
    %c0_i32_1 = arith.constant 0 : i32
    return %c0_i32, %c0_i32_0 : i32, i32
  }
  func.func @transform_2(%arg0: i32) -> (i32, i32) {
    %c0_i32 = arith.constant 0 : i32
    %c0_i32_0 = arith.constant 0 : i32
    %c0_i32_1 = arith.constant 0 : i32
    return %c0_i32, %c0_i32_0 : i32, i32
  }
  func.func @transform_3(%arg0: i32) -> (i32, i32, i32) {
    %c0_i32 = arith.constant 0 : i32
    %c0_i32_0 = arith.constant 0 : i32
    %c0_i32_1 = arith.constant 0 : i32
    return %arg0, %c0_i32, %c0_i32_0 : i32, i32, i32
  }
}

module attributes {stable_mosaic.version = 11 : i64} {
  func.func @_l2norm3_kernel(%arg0: i32, %arg1: memref<1x4x32xf32, #tpu.memory_space<vmem>>, %arg2: memref<1x4x32xf32, #tpu.memory_space<vmem>>) attributes {dimension_semantics = [#tpu.dimension_semantics<parallel>], iteration_bounds = array<i64: 2>, scalar_prefetch = 0 : i64, scratch_operands = 0 : i64, tpu.core_type = #tpu.core_type<tc>, window_params = [{transform_indices = @transform_0, window_bounds = array<i64: 1, 4, 32>}, {transform_indices = @transform_1, window_bounds = array<i64: 1, 4, 32>}]} {
    %c0 = arith.constant 0 : index
    %c0_0 = arith.constant 0 : index
    %c0_1 = arith.constant 0 : index
    %0 = vector.load %arg1[%c0, %c0_0, %c0_1] : memref<1x4x32xf32, #tpu.memory_space<vmem>>, vector<1x4x32xf32>
    %1 = vector.shape_cast %0 : vector<1x4x32xf32> to vector<4x32xf32>
    %2 = arith.mulf %1, %1 : vector<4x32xf32>
    %cst = arith.constant dense<0.000000e+00> : vector<4xf32>
    %3 = vector.multi_reduction <add>, %2, %cst [1] : vector<4x32xf32> to vector<4xf32>
    %4 = vector.shape_cast %3 : vector<4xf32> to vector<4x1xf32>
    %5 = math.rsqrt %4 : vector<4x1xf32>
    %6 = vector.broadcast %5 : vector<4x1xf32> to vector<4x32xf32>
    %7 = arith.mulf %1, %6 : vector<4x32xf32>
    %c0_2 = arith.constant 0 : index
    %c0_3 = arith.constant 0 : index
    %c0_4 = arith.constant 0 : index
    %8 = vector.load %arg2[%c0_2, %c0_3, %c0_4] : memref<1x4x32xf32, #tpu.memory_space<vmem>>, vector<1x4x32xf32>
    %9 = vector.shape_cast %8 : vector<1x4x32xf32> to vector<4x32xf32>
    %10 = vector.shape_cast %7 : vector<4x32xf32> to vector<1x4x32xf32>
    tpu.vector_store %arg2[%c0_2, %c0_3, %c0_4], %10 {strides = array<i32>} : memref<1x4x32xf32, #tpu.memory_space<vmem>>, vector<1x4x32xf32>,
    return
  }
  func.func @transform_0(%arg0: i32) -> (i32, i32, i32) {
    %c0_i32 = arith.constant 0 : i32
    %c0_i32_0 = arith.constant 0 : i32
    %c0_i32_1 = arith.constant 0 : i32
    return %arg0, %c0_i32, %c0_i32_0 : i32, i32, i32
  }
  func.func @transform_1(%arg0: i32) -> (i32, i32, i32) {
    %c0_i32 = arith.constant 0 : i32
    %c0_i32_0 = arith.constant 0 : i32
    %c0_i32_1 = arith.constant 0 : i32
    return %arg0, %c0_i32, %c0_i32_0 : i32, i32, i32
  }
}

module attributes {stable_mosaic.version = 11 : i64} {
  func.func @_l2norm2_kernel(%arg0: i32, %arg1: memref<2x32xf32, #tpu.memory_space<vmem>>, %arg2: memref<2x32xf32, #tpu.memory_space<vmem>>) attributes {dimension_semantics = [#tpu.dimension_semantics<parallel>], iteration_bounds = array<i64: 1>, scalar_prefetch = 0 : i64, scratch_operands = 0 : i64, tpu.core_type = #tpu.core_type<tc>, window_params = [{pipeline_mode = #tpu.pipeline_mode<synchronous>, transform_indices = @transform_0, window_bounds = array<i64: 2, 32>}, {pipeline_mode = #tpu.pipeline_mode<synchronous>, transform_indices = @transform_1, window_bounds = array<i64: 2, 32>}]} {
    %c0 = arith.constant 0 : index
    %c0_0 = arith.constant 0 : index
    %0 = vector.load %arg1[%c0, %c0_0] : memref<2x32xf32, #tpu.memory_space<vmem>>, vector<2x32xf32>
    %1 = arith.mulf %0, %0 : vector<2x32xf32>
    %cst = arith.constant dense<0.000000e+00> : vector<2xf32>
    %2 = vector.multi_reduction <add>, %1, %cst [1] : vector<2x32xf32> to vector<2xf32>
    %3 = vector.shape_cast %2 : vector<2xf32> to vector<2x1xf32>
    %4 = math.rsqrt %3 : vector<2x1xf32>
    %5 = vector.broadcast %4 : vector<2x1xf32> to vector<2x32xf32>
    %6 = arith.mulf %0, %5 : vector<2x32xf32>
    %c0_1 = arith.constant 0 : index
    %c0_2 = arith.constant 0 : index
    %7 = vector.load %arg2[%c0_1, %c0_2] : memref<2x32xf32, #tpu.memory_space<vmem>>, vector<2x32xf32>
    tpu.vector_store %arg2[%c0_1, %c0_2], %6 {strides = array<i32>} : memref<2x32xf32, #tpu.memory_space<vmem>>, vector<2x32xf32>,
    return
  }
  func.func @transform_0(%arg0: i32) -> (i32, i32) {
    %c0_i32 = arith.constant 0 : i32
    %c0_i32_0 = arith.constant 0 : i32
    %c0_i32_1 = arith.constant 0 : i32
    return %c0_i32, %c0_i32_0 : i32, i32
  }
  func.func @transform_1(%arg0: i32) -> (i32, i32) {
    %c0_i32 = arith.constant 0 : i32
    %c0_i32_0 = arith.constant 0 : i32
    %c0_i32_1 = arith.constant 0 : i32
    return %c0_i32, %c0_i32_0 : i32, i32
  }
}

</mosaic_0001>

<bundles_post_ra>
// kernel: prompted_vit_forward.10
= control target key start
LH: loop header
LB: loop body
LE: loop exit
PB: predicated region body
PF: predicated region fallthrough
CT: control target
= control target key end

     0   :  { %s454_s12 = smov 0   ;;  %s514_s0 = inlined_call_operand.vmem [shape: f32[2,4,192], index: 0, kind: input, shape index: {}]   ;;  %s515_s1 = inlined_call_operand.vmem [shape: bf16[192,32], index: 1, kind: input, shape index: {}]   ;;  %s516_s2 = inlined_call_operand.vmem [shape: f32[1,32], index: 2, kind: input, shape index: {}]   ;;  %s517_s3 = inlined_call_operand.vmem [shape: f32[2,4,32], index: 3, kind: output, shape index: {}]  }
   0x1 LB: > { %s378_s13 = sadd.s32 4294967295, %s431_s12   ;;  %p382_p0 = scmp.ge.s32.totalorder %s431_s12, 1  ;;  %s431_s12 = sphi %s454_s12, %s13_s12  }
   0x2   : > { %p137_p1 = scmp.lt.s32.totalorder %s431_s12, 3 }
   0x4   : > { %p138_p2 = pnand %p382_p0, %p137_p1 }
   0x5   : > { %v412_v0 = vld [vmem:[%s515_s1] sm:$0xff] (!%p138_p2)   ;;  %v433_v1 = vmov (!%p138_p2), 0   ;;  %p160_p3 = scmp.lt.s32.totalorder (!%p138_p2), %s378_s13, 1  ;;  %v413_v2 = vld [vmem:[%s515_s1 + $0x8] sm:$0xff] (!%p138_p2)   ;;  %v414_v3 = vld [vmem:[%s515_s1 + $0x10] sm:$0xff] (!%p138_p2)   ;;  %vm279_vm0 = vcmask (!%p138_p2), 523264  }
   0x6   : > { %141 = sbr.rel (%p138_p2) target bundleno = 269 (0x10d), region = 32  ;;  %283 = vmatprep.subr.bf16.mxu0 (!%p138_p2), %v433_v1  ;;  %v415_v4 = vld [vmem:[%s515_s1 + $0x18] sm:$0xff] (!%p138_p2)   ;;  %v416_v7 = vld [vmem:[%s515_s1 + $0x20] sm:$0xff] (!%p138_p2)   ;;  %v417_v9 = vld [vmem:[%s515_s1 + $0x28] sm:$0xff] (!%p138_p2)   ;;  %vm323_vm1 = vcmask (!%p138_p2), 257024  }
   0x7   : > { %284 = vmatpush1.bf16.msra.mxu0 (!%p138_p2), %v412_v0  ;;  %v418_v10 = vld [vmem:[%s515_s1 + $0x30] sm:$0xff] (!%p138_p2)   ;;  %v419_v11 = vld [vmem:[%s515_s1 + $0x38] sm:$0xff] (!%p138_p2)   ;;  %v420_v12 = vld [vmem:[%s515_s1 + $0x40] sm:$0xff] (!%p138_p2)  }
   0x8   : > { %285 = vmatprep.subr.bf16.mxu0 (!%p138_p2), %v433_v1  ;;  %v421_v13 = vld [vmem:[%s515_s1 + $0x48] sm:$0xff] (!%p138_p2)   ;;  %v422_v14 = vld [vmem:[%s515_s1 + $0x50] sm:$0xff] (!%p138_p2)   ;;  %v423_v15 = vld [vmem:[%s515_s1 + $0x58] sm:$0xff] (!%p138_p2)  }
   0x9   : > { %v386_v17 = vld [vmem:[%s516_s2] ss:$0 sm:$0xff] (!%p138_p2) }
   0xb   : > { %286 = vmatpush1.bf16.msra.mxu0 (!%p138_p2), %v413_v2 }
   0xc   : > { %287 = vmatprep.subr.bf16.mxu0 (!%p138_p2), %v433_v1 }
   0xd   : > { %s519_s13 = smov (!%p160_p3, %s378_s13), 1 }
   0xe   : > { %s402_s20 = sshll.u32 %s519_s13, 3  ;;  %s385_s17 = sshll.u32 %s519_s13, 2 }
   0xf   : > { %s164_s23 = scalar_lea.vmem %s514_s0, %s402_s20  ;;  %288 = vmatpush1.bf16.msra.mxu0 %v414_v3  ;;  %s168_s22 = scalar_lea.vmem %s517_s3, %s385_s17 }
  0x10   : > { %289 = vmatprep.subr.bf16.mxu0 %v433_v1  ;;  %v170_v5 = vld [vmem:[%s164_s23] sm:$0xff] }
  0x11   : > { %v172_v6 = vcombine.high %v170_v5, %v170_v5  ;;  %v174_v16 = vpack.c.bf16 %v170_v5, %v170_v5 }
  0x13   : > { %290 = vmatpush1.bf16.msra.mxu0 %v415_v4  ;;  %v175_v8 = vpack.c.bf16 %v172_v6, %v172_v6 }
  0x14   : > { %291 = vmatprep.subr.bf16.mxu0 %v433_v1 }
  0x15   : > { %399 = vmatprep.mubr.msk.bf16.mxu0 %vm279_vm0, %v175_v8 }
  0x17   : > { %292 = vmatpush1.bf16.msra.mxu0 %v416_v7 }
  0x18   : > { %293 = vmatprep.subr.bf16.mxu0 %v433_v1 }
  0x1b   : > { %294 = vmatpush1.bf16.msra.mxu0 %v417_v9 }
  0x1c   : > { %295 = vmatprep.subr.bf16.mxu0 %v433_v1 }
  0x1f   : > { %296 = vmatpush1.bf16.msra.mxu0 %v418_v10 }
  0x20   : > { %297 = vmatprep.subr.bf16.mxu0 %v433_v1 }
  0x23   : > { %298 = vmatpush1.bf16.msra.mxu0 %v419_v11 }
  0x24   : > { %299 = vmatprep.subr.bf16.mxu0 %v433_v1 }
  0x27   : > { %300 = vmatpush1.bf16.msra.mxu0 %v420_v12 }
  0x28   : > { %301 = vmatprep.subr.bf16.mxu0 %v433_v1 }
  0x2b   : > { %302 = vmatpush1.bf16.msra.mxu0 %v421_v13 }
  0x2c   : > { %303 = vmatprep.subr.bf16.mxu0 %v433_v1 }
  0x2f   : > { %304 = vmatpush1.bf16.msra.mxu0 %v422_v14 }
  0x30   : > { %305 = vmatprep.subr.bf16.mxu0 %v433_v1 }
  0x33   : > { %306 = vmatpush1.bf16.msra.mxu0 %v423_v15 }
  0x36   : > { %316 = vmatmul.mubr.bf16.vlgmr.msra.gmra.mrb[0].mxu0 %v174_v16 }
 0x109   : > { %v317_v18 = vpop.f32.mrb[0].mxu0 }
 0x10a   : > { %v318_v19 = vadd.f32 %v386_v17, %v317_v18  ;;  %v319_v20 = vpop.f32.mrb[1].mxu0 }
 0x10b   : > { %v320_v21 = vpop.f32.mrb[2].mxu0 }
 0x10c   : > { %324 = vst.msk [vmem:[%s168_s22] sm:$0xf] %vm323_vm1, %v318_v19  ;;  %v321_v22 = vpop.f32.mrb[3].mxu0 }
 0x10d PF: > { %s13_s12 = sadd.s32 1, %s431_s12  }
 0x10e   : > { %p10_p4 = scmp.ge.s32.totalorder %s13_s12, 4  }
 0x110   :  { %12 = sbr.rel (!%p10_p4) target bundleno = 1 (0x1), region = 62 }

// kernel: prompted_vit_forward.12
= control target key start
LH: loop header
LB: loop body
LE: loop exit
PB: predicated region body
PF: predicated region fallthrough
CT: control target
= control target key end

     0   :  { %s733_s24 = smov 0   ;;  %s816_s0 = inlined_call_operand.vmem [shape: f32[2,9,32], index: 0, kind: input, shape index: {}]   ;;  %s817_s1 = inlined_call_operand.vmem [shape: f32[1,32], index: 1, kind: input, shape index: {}]   ;;  %s818_s2 = inlined_call_operand.vmem [shape: f32[1,32], index: 2, kind: input, shape index: {}]   ;;  %s819_s3 = inlined_call_operand.vmem [shape: bf16[32,128], index: 3, kind: input, shape index: {}]   ;;  %s820_s4 = inlined_call_operand.vmem [shape: f32[1,128], index: 4, kind: input, shape index: {}]   ;;  %s821_s5 = inlined_call_operand.vmem [shape: bf16[128,32], index: 5, kind: input, shape index: {}]   ;;  %s822_s6 = inlined_call_operand.vmem [shape: f32[1,32], index: 6, kind: input, shape index: {}]   ;;  %s823_s7 = inlined_call_operand.vmem [shape: f32[2,9,32], index: 7, kind: output, shape index: {}]  }
   0x1 LB: > { %s587_s25 = sadd.s32 4294967295, %s689_s24   ;;  %p591_p0 = scmp.ge.s32.totalorder %s689_s24, 1  ;;  %s689_s24 = sphi %s733_s24, %s17_s24  }
   0x2   : > { %p237_p1 = scmp.lt.s32.totalorder %s689_s24, 3 }
   0x4   : > { %p238_p2 = pnand %p591_p0, %p237_p1 }
   0x5   : > { %p269_p3 = scmp.lt.s32.totalorder (!%p238_p2), %s587_s25, 1  ;;  %vm284_vm0 = vcmask (!%p238_p2), 261120   ;;  %vm288_vm1 = vcmask (!%p238_p2), 253952   ;;  %v665_v14 = vld [vmem:[%s819_s3] sm:$0xff] (!%p238_p2)   ;;  %v691_v15 = vmov (!%p238_p2), 0.0   ;;  %v666_v16 = vld [vmem:[%s819_s3 + $0x8] sm:$0xff] (!%p238_p2)  }
   0x6   : > { %241 = sbr.rel (%p238_p2) target bundleno = 798 (0x31e), region = 48  ;;  %627 = vmatprep.subr.bf16.mxu0 (!%p238_p2), %v691_v15  ;;  %635 = vmatprep.subr.bf16.mxu1 (!%p238_p2), %v691_v15  ;;  %vm692_vm2 = vmmov (!%p238_p2), 0   ;;  %v596_v25 = vld [vmem:[%s817_s1] ss:$0 sm:$0xff] (!%p238_p2)  ;;  %v668_v35 = vld [vmem:[%s821_s5 + $0x8] sm:$0xff] (!%p238_p2)   ;;  %v669_v36 = vld [vmem:[%s821_s5 + $0x10] sm:$0xff] (!%p238_p2)  }
   0x7   : > { %628 = vmatpush3.bf16.msra.mxu0 (!%p238_p2), %v665_v14  ;;  %631 = vmatprep.mubr.msk.bf16.mxu0 (!%p238_p2), %vm692_vm2, %v691_v15  ;;  %v597_v29 = vld [vmem:[%s818_s2] ss:$0 sm:$0xff] (!%p238_p2)  ;;  %v670_v37 = vld [vmem:[%s821_s5 + $0x18] sm:$0xff] (!%p238_p2)   ;;  %v672_v39 = vld [vmem:[%s821_s5 + $0x28] sm:$0xff] (!%p238_p2)  }
   0x8   : > { %629 = vmatprep.subr.bf16.mxu0 (!%p238_p2), %v691_v15  ;;  %651 = vmatprep.mubr.msk.bf16.mxu1 (!%p238_p2), %vm692_vm2, %v691_v15  ;;  %v667_v34 = vld [vmem:[%s821_s5] sm:$0xff] (!%p238_p2)   ;;  %v673_v40 = vld [vmem:[%s821_s5 + $0x30] sm:$0xff] (!%p238_p2)   ;;  %v674_v41 = vld [vmem:[%s821_s5 + $0x38] sm:$0xff] (!%p238_p2)  }
   0x9   : > { %636 = vmatpush3.bf16.msra.mxu1 (!%p238_p2), %v667_v34  ;;  %v671_v38 = vld [vmem:[%s821_s5 + $0x20] sm:$0xff] (!%p238_p2)  }
   0xa   : > { %637 = vmatprep.subr.bf16.mxu1 (!%p238_p2), %v691_v15  ;;  %v598_v42 = vld [vmem:[%s820_s4] ss:$0 sm:$0xff] (!%p238_p2) }
   0xb   : > { %630 = vmatpush3.bf16.msra.mxu0 (!%p238_p2), %v666_v16 }
   0xd   : > { %s825_s25 = smov (!%p269_p3, %s587_s25), 1  ;;  %638 = vmatpush3.bf16.msra.mxu1 %v668_v35 }
   0xe   : > { %s613_s26 = sshll.u32 %s825_s25, 4  ;;  %639 = vmatprep.subr.bf16.mxu1 %v691_v15 }
   0xf   : > { %s273_s29 = scalar_lea.vmem %s816_s0, %s613_s26  ;;  %s278_s17 = scalar_lea.vmem %s823_s7, %s613_s26 }
  0x10   : > { %v749_v0 = vld [vmem:[%s273_s29] sm:$0xff]  ;;  %v751_v1 = vld [vmem:[%s273_s29 + $0x8] sm:$0x1] }
  0x11   : > { %v285_v2 = vsel %vm284_vm0, %v749_v0, 0.0  ;;  %v289_v3 = vsel %vm288_vm1, %v751_v1, 0.0  ;;  %640 = vmatpush3.bf16.msra.mxu1 %v669_v36 }
  0x12   : > { %286 = vadd.xlane.f32.xlu0 %v285_v2  ;;  %641 = vmatprep.subr.bf16.mxu1 %v691_v15 }
  0x15   : > { %642 = vmatpush3.bf16.msra.mxu1 %v670_v37 }
  0x16   : > { %290 = vadd.xlane.f32.xlu0 %v289_v3  ;;  %643 = vmatprep.subr.bf16.mxu1 %v691_v15 }
  0x19   : > { %644 = vmatpush3.bf16.msra.mxu1 %v671_v38 }
  0x1a   : > { %645 = vmatprep.subr.bf16.mxu1 %v691_v15 }
  0x1d   : > { %646 = vmatpush3.bf16.msra.mxu1 %v672_v39 }
  0x1e   : > { %647 = vmatprep.subr.bf16.mxu1 %v691_v15 }
  0x21   : > { %648 = vmatpush3.bf16.msra.mxu1 %v673_v40 }
  0x22   : > { %649 = vmatprep.subr.bf16.mxu1 %v691_v15 }
  0x25   : > { %650 = vmatpush3.bf16.msra.mxu1 %v674_v41 }
  0x9f   : > { %v287_v4 = vpop.xlane.xlu0 %286 }
  0xa0   : > { %v293_v5 = vmul.f32 0.03125, %v287_v4 }
  0xa2   : > { %v295_v6 = vsub.f32 %v749_v0, %v293_v5 }
  0xa3   : > { %v291_v7 = vpop.xlane.xlu0 %290 }
  0xa4   : > { %v294_v8 = vmul.f32 0.03125, %v291_v7  ;;  %v297_v9 = vmul.f32 %v295_v6, %v295_v6 }
  0xa6   : > { %v296_v10 = vsub.f32 %v751_v1, %v294_v8  ;;  %v299_v11 = vsel %vm284_vm0, %v297_v9, 0.0 }
  0xa7   : > { %300 = vadd.xlane.f32.xlu1 %v299_v11 }
  0xa8   : > { %v298_v12 = vmul.f32 %v296_v10, %v296_v10 }
  0xaa   : > { %v302_v13 = vsel %vm288_vm1, %v298_v12, 0.0 }
  0xab   : > { %303 = vadd.xlane.f32.xlu1 %v302_v13 }
 0x134   : > { %v301_v17 = vpop.xlane.xlu1 %300 }
 0x135   : > { %v305_v18 = vmul.f32 0.03125, %v301_v17 }
 0x137   : > { %v307_v19 = vadd.f32 1e-06, %v305_v18 }
 0x138   : > { %v304_v20 = vpop.xlane.xlu1 %303 }
 0x139   : > { %675 = vrsqrt.f32 %v307_v19  ;;  %v306_v21 = vmul.f32 0.03125, %v304_v20 }
 0x13b   : > { %v308_v22 = vadd.f32 1e-06, %v306_v21 }
 0x13d   : > { %677 = vrsqrt.f32 %v308_v22 }
 0x143   : > { %v676_v23 = vpop.eup %675 }
 0x144   : > { %v311_v24 = vmul.f32 %v676_v23, %v295_v6  ;;  %v602_v6 = vld [vmem:[%s822_s6] ss:$0 sm:$0xff] }
 0x146   : > { %v319_v28 = vmul.f32 %v596_v25, %v311_v24 }
 0x147   : > { %v678_v26 = vpop.eup %677 }
 0x148   : > { %v312_v27 = vmul.f32 %v678_v26, %v296_v10  ;;  %v327_v31 = vadd.f32 %v597_v29, %v319_v28 }
 0x14a   : > { %v320_v30 = vmul.f32 %v596_v25, %v312_v27 }
 0x14c   : > { %v328_v32 = vadd.f32 %v597_v29, %v320_v30 }
 0x14e   : > { %v329_v33 = vpack.c.bf16 %v328_v32, %v327_v31 }
 0x150   : > { %632 = vmatmul.mubr.msk.bf16.vlgmr.msra.gmra.mrb[0].mxu0 %vm284_vm0, %v329_v33 }
 0x223   : > { %v390_v43 = vpop.f32.mrb[0].mxu0 }
 0x224   : > { %v391_v44 = vadd.f32 %v598_v42, %v390_v43  ;;  %v633_v45 = vpop.f32.mrb[1].mxu0 }
 0x225   : > { %v393_v46 = vpop.f32.mrb[2].mxu0 }
 0x226   : > { %v399_v47 = vmul.f32 0.044715, %v391_v44  ;;  %v394_v48 = vadd.f32 %v598_v42, %v393_v46  ;;  %v634_v49 = vpop.f32.mrb[3].mxu0  ;;  %v397_v62 = vmul.f32 0.5, %v391_v44 }
 0x228   : > { %v401_v50 = vmul.f32 %v399_v47, %v391_v44  ;;  %v400_v51 = vmul.f32 0.044715, %v394_v48  ;;  %v398_v63 = vmul.f32 0.5, %v394_v48 }
 0x22a   : > { %v403_v52 = vmul.f32 %v401_v50, %v391_v44  ;;  %v402_v53 = vmul.f32 %v400_v51, %v394_v48 }
 0x22c   : > { %v404_v54 = vmul.f32 %v402_v53, %v394_v48  ;;  %v405_v55 = vadd.f32 %v403_v52, %v391_v44 }
 0x22e   : > { %v406_v56 = vadd.f32 %v404_v54, %v394_v48  ;;  %v407_v57 = vmul.f32 0.7978846, %v405_v55 }
 0x230   : > { %v408_v58 = vmul.f32 0.7978846, %v406_v56  ;;  %679 = vtanh.f32 %v407_v57 }
 0x232   : > { %681 = vtanh.f32 %v408_v58 }
 0x23a   : > { %v680_v59 = vpop.eup %679 }
 0x23b   : > { %v411_v60 = vadd.f32 1.0, %v680_v59 }
 0x23c   : > { %v682_v61 = vpop.eup %681 }
 0x23d   : > { %v412_v2 = vadd.f32 1.0, %v682_v61  ;;  %v413_v3 = vmul.f32 %v411_v60, %v397_v62 }
 0x23f   : > { %v414_v4 = vmul.f32 %v412_v2, %v398_v63 }
 0x241   : > { %v415_v5 = vpack.c.bf16 %v414_v4, %v413_v3 }
 0x243   : > { %652 = vmatmul.mubr.bf16.vlgmr.msra.gmra.mrb[0].mxu1 %v415_v5 }
 0x316   : > { %v521_v7 = vpop.f32.mrb[0].mxu1 }
 0x317   : > { %v522_v8 = vadd.f32 %v602_v6, %v521_v7  ;;  %v653_v9 = vpop.f32.mrb[1].mxu1 }
 0x318   : > { %v524_v10 = vpop.f32.mrb[2].mxu1 }
 0x319   : > { %v528_v11 = vadd.f32 %v522_v8, %v749_v0  ;;  %v525_v12 = vadd.f32 %v602_v6, %v524_v10  ;;  %v654_v13 = vpop.f32.mrb[3].mxu1 }
 0x31b   : > { %530 = vst.msk [vmem:[%s278_s17] sm:$0xff] %vm284_vm0, %v528_v11  ;;  %v529_v14 = vadd.f32 %v525_v12, %v751_v1 }
 0x31d   : > { %531 = vst.msk [vmem:[%s278_s17 + $0x8] sm:$0x1] %vm288_vm1, %v529_v14 }
 0x31e PF: > { %s17_s24 = sadd.s32 1, %s689_s24  }
 0x31f   : > { %p14_p4 = scmp.ge.s32.totalorder %s17_s24, 4  }
 0x321   :  { %16 = sbr.rel (!%p14_p4) target bundleno = 1 (0x1), region = 78 }

// kernel: prompted_vit_forward.17
= control target key start
LH: loop header
LB: loop body
LE: loop exit
PB: predicated region body
PF: predicated region fallthrough
CT: control target
= control target key end

     0   :  { %s332_s12 = smov 0   ;;  %s368_s0 = inlined_call_operand.vmem [shape: f32[2,9,32], index: 0, kind: input, shape index: {}]   ;;  %s369_s1 = inlined_call_operand.vmem [shape: f32[1,32], index: 1, kind: input, shape index: {}]   ;;  %s370_s2 = inlined_call_operand.vmem [shape: f32[1,32], index: 2, kind: input, shape index: {}]   ;;  %s371_s3 = inlined_call_operand.vmem [shape: f32[2,9,32], index: 3, kind: output, shape index: {}]  }
   0x1 LB: > { %s277_s13 = sadd.s32 4294967295, %s310_s12   ;;  %p281_p0 = scmp.ge.s32.totalorder %s310_s12, 1  ;;  %s310_s12 = sphi %s332_s12, %s13_s12  }
   0x2   : > { %p137_p1 = scmp.lt.s32.totalorder %s310_s12, 3 }
   0x4   : > { %p138_p2 = pnand %p281_p0, %p137_p1 }
   0x5   : > { %p161_p3 = scmp.lt.s32.totalorder (!%p138_p2), %s277_s13, 1  ;;  %vm175_vm0 = vcmask (!%p138_p2), 261120   ;;  %vm179_vm1 = vcmask (!%p138_p2), 253952   ;;  %v286_v21 = vld [vmem:[%s369_s1] ss:$0 sm:$0xff] (!%p138_p2) }
   0x6   : > { %141 = sbr.rel (%p138_p2) target bundleno = 335 (0x14f), region = 32  ;;  %v287_v23 = vld [vmem:[%s370_s2] ss:$0 sm:$0xff] (!%p138_p2) }
   0xd   : > { %s373_s13 = smov (!%p161_p3, %s277_s13), 1 }
   0xe   : > { %s290_s14 = sshll.u32 %s373_s13, 4 }
   0xf   : > { %s165_s17 = scalar_lea.vmem %s368_s0, %s290_s14  ;;  %s170_s24 = scalar_lea.vmem %s371_s3, %s290_s14 }
  0x10   : > { %v171_v0 = vld [vmem:[%s165_s17] sm:$0xff]  ;;  %v172_v1 = vld [vmem:[%s165_s17 + $0x8] sm:$0x1] }
  0x11   : > { %v176_v2 = vsel %vm175_vm0, %v171_v0, 0.0  ;;  %v180_v3 = vsel %vm179_vm1, %v172_v1, 0.0 }
  0x12   : > { %177 = vadd.xlane.f32.xlu0 %v176_v2 }
  0x16   : > { %181 = vadd.xlane.f32.xlu0 %v180_v3 }
  0x9f   : > { %v178_v4 = vpop.xlane.xlu0 %177 }
  0xa0   : > { %v184_v5 = vmul.f32 0.03125, %v178_v4 }
  0xa2   : > { %v186_v6 = vsub.f32 %v171_v0, %v184_v5 }
  0xa3   : > { %v182_v7 = vpop.xlane.xlu0 %181 }
  0xa4   : > { %v185_v8 = vmul.f32 0.03125, %v182_v7  ;;  %v188_v9 = vmul.f32 %v186_v6, %v186_v6 }
  0xa6   : > { %v187_v10 = vsub.f32 %v172_v1, %v185_v8  ;;  %v190_v11 = vsel %vm175_vm0, %v188_v9, 0.0 }
  0xa7   : > { %191 = vadd.xlane.f32.xlu1 %v190_v11 }
  0xa8   : > { %v189_v12 = vmul.f32 %v187_v10, %v187_v10 }
  0xaa   : > { %v193_v13 = vsel %vm179_vm1, %v189_v12, 0.0 }
  0xab   : > { %194 = vadd.xlane.f32.xlu1 %v193_v13 }
 0x134   : > { %v192_v14 = vpop.xlane.xlu1 %191 }
 0x135   : > { %v196_v15 = vmul.f32 0.03125, %v192_v14 }
 0x137   : > { %v198_v16 = vadd.f32 1e-06, %v196_v15 }
 0x138   : > { %v195_v17 = vpop.xlane.xlu1 %194 }
 0x139   : > { %300 = vrsqrt.f32 %v198_v16  ;;  %v197_v18 = vmul.f32 0.03125, %v195_v17 }
 0x13b   : > { %v199_v19 = vadd.f32 1e-06, %v197_v18 }
 0x13d   : > { %302 = vrsqrt.f32 %v199_v19 }
 0x143   : > { %v301_v20 = vpop.eup %300 }
 0x144   : > { %v202_v22 = vmul.f32 %v301_v20, %v186_v6 }
 0x146   : > { %v210_v24 = vmul.f32 %v286_v21, %v202_v22 }
 0x147   : > { %v303_v25 = vpop.eup %302 }
 0x148   : > { %v218_v26 = vadd.f32 %v287_v23, %v210_v24  ;;  %v203_v27 = vmul.f32 %v303_v25, %v187_v10 }
 0x14a   : > { %220 = vst.msk [vmem:[%s170_s24] sm:$0xff] %vm175_vm0, %v218_v26  ;;  %v211_v28 = vmul.f32 %v286_v21, %v203_v27 }
 0x14c   : > { %v219_v29 = vadd.f32 %v287_v23, %v211_v28 }
 0x14e   : > { %221 = vst.msk [vmem:[%s170_s24 + $0x8] sm:$0x1] %vm179_vm1, %v219_v29 }
 0x14f PF: > { %s13_s12 = sadd.s32 1, %s310_s12  }
 0x150   : > { %p10_p4 = scmp.ge.s32.totalorder %s13_s12, 4  }
 0x152   :  { %12 = sbr.rel (!%p10_p4) target bundleno = 1 (0x1), region = 62 }

// kernel: prompted_vit_forward.11
= control target key start
LH: loop header
LB: loop body
LE: loop exit
PB: predicated region body
PF: predicated region fallthrough
CT: control target
= control target key end

     0   :  { %s1467_s24 = smov 0   ;;  %s1639_s0 = inlined_call_operand.vmem [shape: f32[2,9,32], index: 0, kind: input, shape index: {}]   ;;  %s1640_s1 = inlined_call_operand.vmem [shape: f32[1,32], index: 1, kind: input, shape index: {}]   ;;  %s1641_s2 = inlined_call_operand.vmem [shape: f32[1,32], index: 2, kind: input, shape index: {}]   ;;  %s1642_s3 = inlined_call_operand.vmem [shape: bf16[32,96], index: 3, kind: input, shape index: {}]   ;;  %s1643_s4 = inlined_call_operand.vmem [shape: f32[1,96], index: 4, kind: input, shape index: {}]   ;;  %s1644_s5 = inlined_call_operand.vmem [shape: bf16[32,32], index: 5, kind: input, shape index: {}]   ;;  %s1645_s6 = inlined_call_operand.vmem [shape: f32[1,32], index: 6, kind: input, shape index: {}]   ;;  %s1646_s7 = inlined_call_operand.vmem [shape: f32[2,9,32], index: 7, kind: output, shape index: {}]  }
   0x1 LB: > { %s1187_s25 = sadd.s32 4294967295, %s1411_s24   ;;  %p1191_p0 = scmp.ge.s32.totalorder %s1411_s24, 1  ;;  %s1411_s24 = sphi %s1467_s24, %s17_s24  }
   0x2   : > { %p237_p1 = scmp.lt.s32.totalorder %s1411_s24, 3 }
   0x4   : > { %p238_p2 = pnand %p1191_p0, %p237_p1 }
   0x5   : > { %p269_p3 = scmp.lt.s32.totalorder (!%p238_p2), %s1187_s25, 1  ;;  %vm284_vm0 = vcmask (!%p238_p2), 261120   ;;  %vm288_vm1 = vcmask (!%p238_p2), 253952   ;;  %v1367_v14 = vld [vmem:[%s1642_s3] sm:$0xff] (!%p238_p2)   ;;  %v1413_v15 = vmov (!%p238_p2), 0.0   ;;  %v1368_v16 = vld [vmem:[%s1642_s3 + $0x8] sm:$0xff] (!%p238_p2)  }
   0x6   : > { %241 = sbr.rel (%p238_p2) target bundleno = 2741 (0xab5), region = 48  ;;  %1251 = vmatprep.subr.bf16.mxu0 (!%p238_p2), %v1413_v15  ;;  %1259 = vmatprep.subr.bf16.mxu1 (!%p238_p2), %v1413_v15  ;;  %vm1414_vm2 = vmmov (!%p238_p2), 0   ;;  %v1196_v25 = vld [vmem:[%s1640_s1] ss:$0 sm:$0xff] (!%p238_p2)  ;;  %vm407_vm3 = vcmask (!%p238_p2), 778240   ;;  %vm405_vm5 = vcmask (!%p238_p2), 781312  }
   0x7   : > { %1252 = vmatpush3.bf16.msra.mxu0 (!%p238_p2), %v1367_v14  ;;  %1255 = vmatprep.mubr.msk.bf16.mxu0 (!%p238_p2), %vm1414_vm2, %v1413_v15  ;;  %v1197_v29 = vld [vmem:[%s1641_s2] ss:$0 sm:$0xff] (!%p238_p2)  ;;  %vm408_vm4 = vsmask.f32 (!%p238_p2), 256  ;;  %v410_v42 = vld [vmem:[#allocation2 + $0x4] sm:$0x1] (!%p238_p2) }
   0x8   : > { %1253 = vmatprep.subr.bf16.mxu0 (!%p238_p2), %v1413_v15  ;;  %1261 = vmatprep.mubr.msk.bf16.mxu1 (!%p238_p2), %vm1414_vm2, %v1413_v15  ;;  %v1198_v34 = vld [vmem:[%s1643_s4] ss:$0 sm:$0xff] (!%p238_p2)  ;;  %vm409_vm6 = vmand (!%p238_p2), %vm407_vm3, %vm408_vm4  ;;  %s1415_s17 = smov (!%p238_p2), 96   ;;  %s1416_s18 = smov (!%p238_p2), 88   ;;  %vm431_vm7 = vcmask (!%p238_p2), 64512   ;;  %vm479_vm8 = vcmask (!%p238_p2), 72704  }
   0x9   : > { %s1417_s19 = smov (!%p238_p2), 120   ;;  %s1418_s20 = smov (!%p238_p2), 80   ;;  %vm483_vm9 = vcmask (!%p238_p2), 65536   ;;  %vm509_vm10 = vcmask (!%p238_p2), 1043456   ;;  %vm510_vm11 = vcmask (!%p238_p2), 1044480  }
   0xa   : > { %s1419_s21 = smov (!%p238_p2), 64   ;;  %s1420_s22 = smov (!%p238_p2), 112  }
   0xb   : > { %1254 = vmatpush3.bf16.msra.mxu0 (!%p238_p2), %v1368_v16  ;;  %s1422_s28 = smov (!%p238_p2), 72   ;;  %s1424_s30 = smov (!%p238_p2), 56  }
   0xc   : > { %1265 = vmatprep.subr.bf16.mxu0 (!%p238_p2), %v1413_v15  ;;  %s1425_s8 = smov (!%p238_p2), 40   ;;  %s1426_s9 = smov (!%p238_p2), 48  }
   0xd   : > { %s1648_s25 = smov (!%p269_p3, %s1187_s25), 1 }
   0xe   : > { %s1220_s26 = sshll.u32 %s1648_s25, 4 }
   0xf   : > { %s273_s29 = scalar_lea.vmem %s1639_s0, %s1220_s26 }
  0x10   : > { %v1483_v0 = vld [vmem:[%s273_s29] sm:$0xff]  ;;  %v1485_v1 = vld [vmem:[%s273_s29 + $0x8] sm:$0x1]  ;;  %s1423_s29 = smov 104  }
  0x11   : > { %v285_v2 = vsel %vm284_vm0, %v1483_v0, 0.0  ;;  %v289_v3 = vsel %vm288_vm1, %v1485_v1, 0.0 }
  0x12   : > { %286 = vadd.xlane.f32.xlu0 %v285_v2 }
  0x16   : > { %290 = vadd.xlane.f32.xlu0 %v289_v3 }
  0x9f   : > { %v287_v4 = vpop.xlane.xlu0 %286 }
  0xa0   : > { %v293_v5 = vmul.f32 0.03125, %v287_v4 }
  0xa2   : > { %v295_v6 = vsub.f32 %v1483_v0, %v293_v5  ;;  %v1421_v5 = vmov 65535  }
  0xa3   : > { %v291_v7 = vpop.xlane.xlu0 %290 }
  0xa4   : > { %v294_v8 = vmul.f32 0.03125, %v291_v7  ;;  %v297_v9 = vmul.f32 %v295_v6, %v295_v6 }
  0xa6   : > { %v296_v10 = vsub.f32 %v1485_v1, %v294_v8  ;;  %v299_v11 = vsel %vm284_vm0, %v297_v9, 0.0 }
  0xa7   : > { %300 = vadd.xlane.f32.xlu1 %v299_v11 }
  0xa8   : > { %v298_v12 = vmul.f32 %v296_v10, %v296_v10 }
  0xaa   : > { %v302_v13 = vsel %vm288_vm1, %v298_v12, 0.0 }
  0xab   : > { %303 = vadd.xlane.f32.xlu1 %v302_v13 }
 0x134   : > { %v301_v17 = vpop.xlane.xlu1 %300 }
 0x135   : > { %v305_v18 = vmul.f32 0.03125, %v301_v17 }
 0x137   : > { %v307_v19 = vadd.f32 1e-06, %v305_v18 }
 0x138   : > { %v304_v20 = vpop.xlane.xlu1 %303 }
 0x139   : > { %1369 = vrsqrt.f32 %v307_v19  ;;  %v306_v21 = vmul.f32 0.03125, %v304_v20 }
 0x13b   : > { %v308_v22 = vadd.f32 1e-06, %v306_v21 }
 0x13d   : > { %1371 = vrsqrt.f32 %v308_v22 }
 0x143   : > { %v1370_v23 = vpop.eup %1369 }
 0x144   : > { %v311_v24 = vmul.f32 %v1370_v23, %v295_v6  ;;  %v511_v6 = vsel %vm509_vm10, 4294967295, %v1421_v5  ;;  %v558_v23 = vld [vmem:[%s1644_s5] sm:$0xf] }
 0x145   : > { %v1540_v8 = vsel %vm510_vm11, %v511_v6, 0 }
 0x146   : > { %v319_v28 = vmul.f32 %v1196_v25, %v311_v24  ;;  %v563_v24 = vsel %vm509_vm10, %v558_v23, 0 }
 0x147   : > { %v1372_v26 = vpop.eup %1371 }
 0x148   : > { %v312_v27 = vmul.f32 %v1372_v26, %v296_v10  ;;  %v327_v31 = vadd.f32 %v1197_v29, %v319_v28 }
 0x14a   : > { %v320_v30 = vmul.f32 %v1196_v25, %v312_v27 }
 0x14c   : > { %v328_v32 = vadd.f32 %v1197_v29, %v320_v30 }
 0x14e   : > { %v329_v33 = vpack.c.bf16 %v328_v32, %v327_v31 }
 0x150   : > { %1256 = vmatmul.mubr.msk.bf16.vlgmr.msra.gmra.mrb[0].mxu0 %vm284_vm0, %v329_v33 }
 0x151   : > { %1267 = vmatprep.mubr.msk.bf16.mxu0 %vm1414_vm2, %v1413_v15 }
 0x223   : > { %v390_v35 = vpop.f32.mrb[0].mxu0 }
 0x224   : > { %v391_v36 = vadd.f32 %v1198_v34, %v390_v35  ;;  %v1257_v37 = vpop.f32.mrb[1].mxu0 }
 0x225   : > { %v393_v38 = vpop.f32.mrb[2].mxu0 }
 0x226   : > { %v1222_v39 = vpack.c.bf16 %v391_v36, %v391_v36  ;;  %v394_v40 = vadd.f32 %v1198_v34, %v393_v38  ;;  %v1258_v41 = vpop.f32.mrb[3].mxu0 }
 0x228   : > { %406 = vst.msk [vmem:[#allocation2] sm:$0xf] %vm405_vm5, %v1222_v39  ;;  %v1223_v43 = vpack.c.bf16 %v394_v40, %v394_v40 }
 0x22a   : > { %v411_v44 = vsel %vm409_vm6, %v1223_v43, %v410_v42 }
 0x22b   : > { %412 = vst [vmem:[#allocation2 + $0x4] sm:$0x1] %v411_v44 }
 0x22f   : > { %v422_v45 = vld [vmem:[#allocation2] sm:$0xf] }
 0x232   : > { %v423_v46 = vld [vmem:[#allocation2 + $0x4] sm:$0x1] }
 0x233   : > { %v1521_v47 = vcombine.low %v422_v45, %v423_v46 }
 0x235   : > { %429 = vrot.lane.b32.xlu0 %v1521_v47, %s1415_s17 }
 0x239   : > { %610 = vrot.lane.b32.xlu0 %v1521_v47, %s1416_s18 }
 0x23d   : > { %608 = vrot.lane.b32.xlu0 %v1521_v47, %s1417_s19 }
 0x241   : > { %784 = vrot.lane.b32.xlu0 %v1521_v47, %s1418_s20  ;;  %s278_s20 = scalar_lea.vmem %s1646_s7, %s1220_s26 }
 0x2a7   : > { %v430_v48 = vpop.permute.xlu0 %429 }
 0x2a8   : > { %v436_v49 = vsel %vm431_vm7, %v430_v48, 0 }
 0x2a9   : > { %1260 = vmatpush3.bf16.xpose.msra.mxu1 %v436_v49 }
 0x2aa   : > { %1271 = vmatprep.subr.bf16.mxu1 %v1413_v15 }
 0x2ab   : > { %v611_v12 = vpop.permute.xlu0 %610 }
 0x2ac   : > { %v616_v19 = vsel %vm431_vm7, %v611_v12, 0 }
 0x2af   : > { %v609_v18 = vpop.permute.xlu0 %608 }
 0x2b0   : > { %1262 = vmatmul.mubr.msk.bf16.vlgmr.msra.gmra.mrb[0].mxu1 %vm431_vm7, %v1521_v47 }
 0x2b1   : > { %1273 = vmatprep.mubr.msk.bf16.mxu1 %vm1414_vm2, %v1413_v15  ;;  %1272 = vmatpush3.bf16.msra.mxu1 %v563_v24 }
 0x2b2   : > { %1283 = vmatprep.subr.bf16.mxu1 %v1413_v15 }
 0x2b3   : > { %v785_v20 = vpop.permute.xlu0 %784 }
 0x2b4   : > { %v790_v21 = vsel %vm431_vm7, %v785_v20, 0 }
 0x383   : > { %v472_v50 = vpop.f32.mrb[0].mxu1 }
 0x384   : > { %v1263_v51 = vpop.f32.mrb[1].mxu1  ;;  %v480_v52 = vsel %vm479_vm8, %v472_v50, -inf }
 0x385   : > { %481 = vmax.xlane.f32.xlu1 %v480_v52  ;;  %v475_v53 = vpop.f32.mrb[2].mxu1 }
 0x386   : > { %v1264_v54 = vpop.f32.mrb[3].mxu1  ;;  %v484_v55 = vsel %vm483_vm9, %v475_v53, -inf }
 0x389   : > { %485 = vmax.xlane.f32.xlu1 %v484_v55 }
 0x412   : > { %v482_v56 = vpop.xlane.xlu1 %481 }
 0x413   : > { %v487_v57 = vsub.f32 %v472_v50, %v482_v56 }
 0x415   : > { %v489_v58 = vmul.f32 1.442695, %v487_v57 }
 0x416   : > { %v486_v59 = vpop.xlane.xlu1 %485 }
 0x417   : > { %1373 = vpow2.f32 %v489_v58  ;;  %v488_v60 = vsub.f32 %v475_v53, %v486_v59 }
 0x419   : > { %v491_v61 = vmul.f32 1.442695, %v488_v60 }
 0x41b   : > { %1375 = vpow2.f32 %v491_v61 }
 0x421   : > { %v1374_v62 = vpop.eup %1373 }
 0x422   : > { %v493_v63 = vsel %vm479_vm8, %v1374_v62, 0.0 }
 0x423   : > { %494 = vadd.xlane.f32.xlu1 %v493_v63 }
 0x425   : > { %v1376_v2 = vpop.eup %1375 }
 0x426   : > { %v496_v3 = vsel %vm483_vm9, %v1376_v2, 0.0 }
 0x427   : > { %497 = vadd.xlane.f32.xlu1 %v496_v3 }
 0x438   : > { %504 = vrot.lane.b32.xlu1 %v1521_v47, %s1419_s21 }
 0x43c   : > { %782 = vrot.lane.b32.xlu1 %v1521_v47, %s1420_s22 }
 0x4b0   : > { %v495_v4 = vpop.xlane.xlu1 %494 }
 0x4b1   : > { %1377 = vrcp.f32 %v495_v4 }
 0x4b4   : > { %v498_v7 = vpop.xlane.xlu1 %497 }
 0x4b5   : > { %1379 = vrcp.f32 %v498_v7 }
 0x4b8   : > { %v505_v9 = vpop.permute.xlu1 %504 }
 0x4b9   : > { %v514_v10 = vand.u32 %v1540_v8, %v505_v9 }
 0x4bb   : > { %1266 = vmatpush3.bf16.msra.mxu0 %v514_v10  ;;  %v1378_v11 = vpop.eup %1377 }
 0x4bc   : > { %1277 = vmatprep.subr.bf16.mxu0 %v1413_v15  ;;  %v501_v14 = vmul.f32 %v1378_v11, %v1374_v62  ;;  %v783_v22 = vpop.permute.xlu1 %782 }
 0x4bf   : > { %v1380_v13 = vpop.eup %1379 }
 0x4c0   : > { %v502_v16 = vmul.f32 %v1380_v13, %v1376_v2 }
 0x4c2   : > { %v503_v17 = vpack.c.bf16 %v502_v16, %v501_v14 }
 0x4c4   : > { %1268 = vmatmul.mubr.msk.bf16.vlgmr.msra.gmra.mrb[4].mxu0 %vm479_vm8, %v503_v17 }
 0x4c5   : > { %1278 = vmatpush3.bf16.xpose.msra.mxu0 %v616_v19  ;;  %1279 = vmatprep.mubr.msk.bf16.mxu0 %vm1414_vm2, %v1413_v15 }
 0x4c6   : > { %1295 = vmatprep.subr.bf16.mxu0 %v1413_v15 }
 0x4cc   : > { %1280 = vmatmul.mubr.msk.bf16.vlgmr.msra.gmra.mrb[8].mxu0 %vm431_vm7, %v609_v18 }
 0x4cd   : > { %1296 = vmatpush3.bf16.xpose.msra.mxu0 %v790_v21  ;;  %1297 = vmatprep.mubr.msk.bf16.mxu0 %vm1414_vm2, %v1413_v15 }
 0x4ce   : > { %1301 = vmatprep.subr.bf16.mxu0 %v1413_v15 }
 0x4d4   : > { %1298 = vmatmul.mubr.msk.bf16.vlgmr.msra.gmra.mrb[12].mxu0 %vm431_vm7, %v783_v22 }
 0x4d5   : > { %1303 = vmatprep.mubr.msk.bf16.mxu0 %vm1414_vm2, %v1413_v15 }
 0x597   : > { %v550_v25 = vpop.f32.mrb[4].mxu0 }
 0x598   : > { %v1269_v26 = vpop.f32.mrb[5].mxu0 }
 0x599   : > { %v553_v27 = vpop.f32.mrb[6].mxu0 }
 0x59a   : > { %v557_v28 = vpack.c.bf16 %v553_v27, %v550_v25  ;;  %v1270_v29 = vpop.f32.mrb[7].mxu0 }
 0x59c   : > { %1274 = vmatmul.mubr.msk.bf16.vlgmr.msra.gmra.mrb[4].mxu1 %vm431_vm7, %v557_v28 }
 0x59d   : > { %1285 = vmatprep.mubr.msk.bf16.mxu1 %vm1414_vm2, %v1413_v15 }
 0x59f   : > { %v652_v30 = vpop.f32.mrb[8].mxu0 }
 0x5a0   : > { %v1281_v31 = vpop.f32.mrb[9].mxu0  ;;  %v659_v40 = vsel %vm479_vm8, %v652_v30, -inf }
 0x5a1   : > { %v1565_v32 = vpop.f32.mrb[10].mxu0 }
 0x5a2   : > { %v1282_v33 = vpop.f32.mrb[11].mxu0  ;;  %v662_v59 = vsel %vm483_vm9, %v1565_v32, -inf }
 0x5a7   : > { %v826_v34 = vpop.f32.mrb[12].mxu0 }
 0x5a8   : > { %v1299_v35 = vpop.f32.mrb[13].mxu0  ;;  %v833_v36 = vsel %vm479_vm8, %v826_v34, -inf }
 0x5a9   : > { %834 = vmax.xlane.f32.xlu0 %v833_v36  ;;  %v829_v37 = vpop.f32.mrb[14].mxu0 }
 0x5aa   : > { %v1300_v38 = vpop.f32.mrb[15].mxu0  ;;  %v836_v39 = vsel %vm483_vm9, %v829_v37, -inf }
 0x5ab   : > { %837 = vmax.xlane.f32.xlu1 %v836_v39 }
 0x5bc   : > { %958 = vrot.lane.b32.xlu1 %v1521_v47, %s1422_s28 }
 0x5c0   : > { %956 = vrot.lane.b32.xlu1 %v1521_v47, %s1423_s29 }
 0x5e4   : > { %660 = vmax.xlane.f32.xlu1 %v659_v40 }
 0x5f5   : > { %682 = vrot.lane.b32.xlu1 %v1521_v47, %s1424_s30 }
 0x5f9   : > { %1030 = vrot.lane.b32.xlu1 %v1521_v47, %s1425_s8 }
 0x636   : > { %v835_v41 = vpop.xlane.xlu0 %834 }
 0x637   : > { %v839_v42 = vsub.f32 %v826_v34, %v835_v41  ;;  %v732_v34 = vld [vmem:[%s1644_s5 + $0x4] sm:$0xf] }
 0x638   : > { %v838_v43 = vpop.xlane.xlu1 %837  ;;  %v737_v35 = vsel %vm509_vm10, %v732_v34, 0 }
 0x639   : > { %v841_v44 = vmul.f32 1.442695, %v839_v42  ;;  %v840_v45 = vsub.f32 %v829_v37, %v838_v43 }
 0x63b   : > { %1381 = vpow2.f32 %v841_v44  ;;  %v843_v46 = vmul.f32 1.442695, %v840_v45 }
 0x63c   : > { %v959_v52 = vpop.permute.xlu1 %958 }
 0x63d   : > { %1383 = vpow2.f32 %v843_v46  ;;  %v964_v9 = vsel %vm431_vm7, %v959_v52, 0 }
 0x640   : > { %v957_v53 = vpop.permute.xlu1 %956 }
 0x645   : > { %v1382_v48 = vpop.eup %1381 }
 0x646   : > { %v845_v49 = vsel %vm479_vm8, %v1382_v48, 0.0 }
 0x647   : > { %v1384_v50 = vpop.eup %1383  ;;  %846 = vadd.xlane.f32.xlu0 %v845_v49 }
 0x648   : > { %v848_v51 = vsel %vm483_vm9, %v1384_v50, 0.0 }
 0x64b   : > { %849 = vadd.xlane.f32.xlu0 %v848_v51 }
 0x661   : > { %856 = vrot.lane.b32.xlu0 %v1521_v47, %s1426_s9 }
 0x671   : > { %v661_v54 = vpop.xlane.xlu1 %660 }
 0x672   : > { %v665_v55 = vsub.f32 %v652_v30, %v661_v54 }
 0x674   : > { %v667_v56 = vmul.f32 1.442695, %v665_v55 }
 0x675   : > { %v683_v57 = vpop.permute.xlu1 %682 }
 0x676   : > { %1385 = vpow2.f32 %v667_v56  ;;  %v688_v58 = vand.u32 %v683_v57, %v1540_v8 }
 0x678   : > { %1284 = vmatpush3.bf16.msra.mxu1 %v688_v58 }
 0x679   : > { %1289 = vmatprep.subr.bf16.mxu1 %v1413_v15  ;;  %v1031_v54 = vpop.permute.xlu1 %1030 }
 0x67a   : > { %v1036_v55 = vand.u32 %v1031_v54, %v1540_v8 }
 0x680   : > { %v1386_v60 = vpop.eup %1385  ;;  %663 = vmax.xlane.f32.xlu0 %v662_v59 }
 0x681   : > { %v671_v61 = vsel %vm479_vm8, %v1386_v60, 0.0 }
 0x684   : > { %672 = vadd.xlane.f32.xlu0 %v671_v61 }
 0x6d4   : > { %v847_v47 = vpop.xlane.xlu0 %846 }
 0x6d5   : > { %1387 = vrcp.f32 %v847_v47 }
 0x6d8   : > { %v850_v62 = vpop.xlane.xlu0 %849 }
 0x6d9   : > { %1389 = vrcp.f32 %v850_v62 }
 0x6dc   : > { %v857_v63 = vpop.permute.xlu0 %856 }
 0x6dd   : > { %v862_v2 = vand.u32 %v857_v63, %v1540_v8 }
 0x6df   : > { %1302 = vmatpush3.bf16.msra.mxu0 %v862_v2  ;;  %v1388_v3 = vpop.eup %1387 }
 0x6e0   : > { %1313 = vmatprep.subr.bf16.mxu0 %v1413_v15  ;;  %v853_v5 = vmul.f32 %v1388_v3, %v1382_v48  ;;  %v906_v48 = vld [vmem:[%s1644_s5 + $0x8] sm:$0xf] }
 0x6e3   : > { %v1390_v4 = vpop.eup %1389 }
 0x6e4   : > { %v854_v6 = vmul.f32 %v1390_v4, %v1384_v50 }
 0x6e6   : > { %v855_v7 = vpack.c.bf16 %v854_v6, %v853_v5  ;;  %v1204_v6 = vld [vmem:[%s1645_s6] ss:$0 sm:$0xff] }
 0x6e8   : > { %1304 = vmatmul.mubr.msk.bf16.vlgmr.msra.gmra.mrb[16].mxu0 %vm479_vm8, %v855_v7  ;;  %v420_v7 = vadd.f32 %v1204_v6, %v1483_v0 }
 0x6e9   : > { %1314 = vmatpush3.bf16.xpose.msra.mxu0 %v964_v9  ;;  %1315 = vmatprep.mubr.msk.bf16.mxu0 %vm1414_vm2, %v1413_v15  ;;  %v421_v9 = vadd.f32 %v1204_v6, %v1485_v1 }
 0x6f0   : > { %1316 = vmatmul.mubr.msk.bf16.vlgmr.msra.gmra.mrb[20].mxu0 %vm431_vm7, %v957_v53  ;;  %v911_v53 = vsel %vm509_vm10, %v906_v48, 0 }
 0x70d   : > { %v664_v10 = vpop.xlane.xlu0 %663 }
 0x70e   : > { %v666_v11 = vsub.f32 %v1565_v32, %v664_v10 }
 0x710   : > { %v669_v12 = vmul.f32 1.442695, %v666_v11 }
 0x711   : > { %v673_v16 = vpop.xlane.xlu0 %672 }
 0x712   : > { %1391 = vpow2.f32 %v669_v12 }
 0x713   : > { %1393 = vrcp.f32 %v673_v16 }
 0x71c   : > { %v1392_v13 = vpop.eup %1391 }
 0x71d   : > { %v674_v14 = vsel %vm483_vm9, %v1392_v13, 0.0  ;;  %v1394_v18 = vpop.eup %1393 }
 0x71e   : > { %675 = vadd.xlane.f32.xlu0 %v674_v14  ;;  %v679_v20 = vmul.f32 %v1394_v18, %v1386_v60  ;;  %v1080_v60 = vld [vmem:[%s1644_s5 + $0xc] sm:$0xf] }
 0x71f   : > { %v1085_v62 = vsel %vm509_vm10, %v1080_v60, 0 }
 0x7ab   : > { %v676_v17 = vpop.xlane.xlu0 %675 }
 0x7ac   : > { %1395 = vrcp.f32 %v676_v17 }
 0x7b6   : > { %v1396_v19 = vpop.eup %1395 }
 0x7b7   : > { %v680_v21 = vmul.f32 %v1396_v19, %v1392_v13 }
 0x7b9   : > { %v681_v22 = vpack.c.bf16 %v680_v21, %v679_v20 }
 0x7bb   : > { %1286 = vmatmul.mubr.msk.bf16.vlgmr.msra.gmra.mrb[8].mxu1 %vm479_vm8, %v681_v22  ;;  %v898_v23 = vpop.f32.mrb[16].mxu0 }
 0x7bc   : > { %v1305_v24 = vpop.f32.mrb[17].mxu0  ;;  %1291 = vmatprep.mubr.msk.bf16.mxu1 %vm1414_vm2, %v1413_v15  ;;  %1290 = vmatpush3.bf16.msra.mxu1 %v737_v35 }
 0x7bd   : > { %v901_v25 = vpop.f32.mrb[18].mxu0  ;;  %1307 = vmatprep.subr.bf16.mxu1 %v1413_v15 }
 0x7be   : > { %v905_v26 = vpack.c.bf16 %v901_v25, %v898_v23  ;;  %v1306_v27 = vpop.f32.mrb[19].mxu0 }
 0x7c3   : > { %v1000_v28 = vpop.f32.mrb[20].mxu0 }
 0x7c4   : > { %v1317_v29 = vpop.f32.mrb[21].mxu0  ;;  %v1007_v30 = vsel %vm479_vm8, %v1000_v28, -inf }
 0x7c5   : > { %1008 = vmax.xlane.f32.xlu0 %v1007_v30  ;;  %v1003_v31 = vpop.f32.mrb[22].mxu0 }
 0x7c6   : > { %v1318_v32 = vpop.f32.mrb[23].mxu0  ;;  %v1010_v33 = vsel %vm483_vm9, %v1003_v31, -inf }
 0x7c9   : > { %1011 = vmax.xlane.f32.xlu0 %v1010_v33 }
 0x852   : > { %v1009_v36 = vpop.xlane.xlu0 %1008 }
 0x853   : > { %v1013_v37 = vsub.f32 %v1000_v28, %v1009_v36 }
 0x855   : > { %v1015_v38 = vmul.f32 1.442695, %v1013_v37 }
 0x856   : > { %v1012_v39 = vpop.xlane.xlu0 %1011 }
 0x857   : > { %1397 = vpow2.f32 %v1015_v38  ;;  %v1014_v40 = vsub.f32 %v1003_v31, %v1012_v39 }
 0x859   : > { %v1017_v41 = vmul.f32 1.442695, %v1014_v40 }
 0x85b   : > { %1399 = vpow2.f32 %v1017_v41 }
 0x861   : > { %v1398_v42 = vpop.eup %1397 }
 0x862   : > { %v1019_v43 = vsel %vm479_vm8, %v1398_v42, 0.0 }
 0x863   : > { %1020 = vadd.xlane.f32.xlu0 %v1019_v43 }
 0x865   : > { %v1400_v44 = vpop.eup %1399 }
 0x866   : > { %v1022_v45 = vsel %vm483_vm9, %v1400_v44, 0.0 }
 0x867   : > { %1023 = vadd.xlane.f32.xlu0 %v1022_v45 }
 0x88e   : > { %v724_v46 = vpop.f32.mrb[8].mxu1 }
 0x88f   : > { %v1287_v49 = vpop.f32.mrb[9].mxu1 }
 0x890   : > { %v727_v50 = vpop.f32.mrb[10].mxu1 }
 0x891   : > { %v731_v51 = vpack.c.bf16 %v727_v50, %v724_v46  ;;  %v1288_v52 = vpop.f32.mrb[11].mxu1 }
 0x893   : > { %1292 = vmatmul.mubr.msk.bf16.vlgmr.msra.gmra.mrb[4].mxu1 %vm431_vm7, %v731_v51 }
 0x894   : > { %1308 = vmatpush3.bf16.msra.mxu1 %v911_v53  ;;  %1309 = vmatprep.mubr.msk.bf16.mxu1 %vm1414_vm2, %v1413_v15 }
 0x895   : > { %1319 = vmatprep.subr.bf16.mxu1 %v1413_v15 }
 0x89f   : > { %1310 = vmatmul.mubr.msk.bf16.vlgmr.msra.gmra.mrb[4].mxu1 %vm431_vm7, %v905_v26 }
 0x8a0   : > { %1320 = vmatpush3.bf16.msra.mxu1 %v1036_v55  ;;  %1321 = vmatprep.mubr.msk.bf16.mxu1 %vm1414_vm2, %v1413_v15 }
 0x8a1   : > { %1325 = vmatprep.subr.bf16.mxu1 %v1413_v15 }
 0x8f0   : > { %v1021_v56 = vpop.xlane.xlu0 %1020 }
 0x8f1   : > { %1401 = vrcp.f32 %v1021_v56 }
 0x8f4   : > { %v1024_v57 = vpop.xlane.xlu0 %1023 }
 0x8f5   : > { %1403 = vrcp.f32 %v1024_v57 }
 0x8fb   : > { %v1402_v58 = vpop.eup %1401 }
 0x8fc   : > { %v1027_v61 = vmul.f32 %v1402_v58, %v1398_v42 }
 0x8ff   : > { %v1404_v59 = vpop.eup %1403 }
 0x900   : > { %v1028_v8 = vmul.f32 %v1404_v59, %v1400_v44 }
 0x902   : > { %v1029_v47 = vpack.c.bf16 %v1028_v8, %v1027_v61 }
 0x904   : > { %1322 = vmatmul.mubr.msk.bf16.vlgmr.msra.gmra.mrb[12].mxu1 %vm479_vm8, %v1029_v47 }
 0x905   : > { %1326 = vmatpush3.bf16.msra.mxu1 %v1085_v62  ;;  %1327 = vmatprep.mubr.msk.bf16.mxu1 %vm1414_vm2, %v1413_v15 }
 0x9d7   : > { %v1072_v63 = vpop.f32.mrb[12].mxu1 }
 0x9d8   : > { %v1323_v2 = vpop.f32.mrb[13].mxu1 }
 0x9d9   : > { %v1075_v3 = vpop.f32.mrb[14].mxu1 }
 0x9da   : > { %v1079_v4 = vpack.c.bf16 %v1075_v3, %v1072_v63  ;;  %v1324_v5 = vpop.f32.mrb[15].mxu1 }
 0x9dc   : > { %1328 = vmatmul.mubr.msk.bf16.vlgmr.msra.gmra.mrb[4].mxu1 %vm431_vm7, %v1079_v4 }
 0xaaf   : > { %v1121_v15 = vpop.f32.mrb[4].mxu1 }
 0xab0   : > { %v1331_v10 = vadd.f32 %v1121_v15, %v420_v7  ;;  %v1329_v11 = vpop.f32.mrb[5].mxu1 }
 0xab1   : > { %v1124_v12 = vpop.f32.mrb[6].mxu1 }
 0xab2   : > { %1130 = vst.msk [vmem:[%s278_s20] sm:$0xff] %vm284_vm0, %v1331_v10  ;;  %v1332_v13 = vadd.f32 %v1124_v12, %v421_v9  ;;  %v1330_v14 = vpop.f32.mrb[7].mxu1 }
 0xab4   : > { %1131 = vst.msk [vmem:[%s278_s20 + $0x8] sm:$0x1] %vm288_vm1, %v1332_v13 }
 0xab5 PF: > { %s17_s24 = sadd.s32 1, %s1411_s24  }
 0xab6   : > { %p14_p4 = scmp.ge.s32.totalorder %s17_s24, 4  }
 0xab8   :  { %16 = sbr.rel (!%p14_p4) target bundleno = 1 (0x1), region = 78 }

// kernel: prompted_vit_forward.18
= control target key start
LH: loop header
LB: loop body
LE: loop exit
PB: predicated region body
PF: predicated region fallthrough
CT: control target
= control target key end

     0   :  { %6 = vsyncpa [#allocation3], 0  ;;  %s420_s0 = inlined_call_operand.vmem [shape: f32[2,4,32], index: 0, kind: input, shape index: {}]   ;;  %s421_s1 = inlined_call_operand.hbm [shape: f32[2,4,32], index: 1, kind: output, shape index: {}]  }
   0x1   :  { %8 = vsyncpa [#allocation3 + $0x1], 0  ;;  %s320_s6 = smov 0   ;;  %s322_s7 = smov 0  }
   0x2   :  { %s324_s8 = smov 0   ;;  %s326_s9 = smov 0  }
   0x3 LB: > { %s341_s10 = sadd.s32 4294967295, %s307_s9   ;;  %s194_s11 = sadd.s32 4294967294, %s307_s9   ;;  %s307_s9 = sphi %s326_s9, %s427_s9   ;;  %s303_s8 = sphi %s324_s8, %s426_s8   ;;  %s299_s7 = sphi %s322_s7, %s425_s7   ;;  %s295_s6 = sphi %s320_s6, %s424_s6  }
   0x4   : > { %s345_s12 = sadd.s32 1, %s307_s9   ;;  %s47_s13 = sadd.s32 1, %s303_s8 }
   0x5   : > { %s44_s14 = ssub.s32 %s307_s9, %s345_s12  ;;  %p57_p0 = scmp.ne.s32.totalorder %s303_s8, %s299_s7 }
   0x6   : > { %p45_p1 = scmp.eq.s32.totalorder %s44_s14, 0  ;;  %p58_p2 = scmp.eq.s32.totalorder %s341_s10, 1 }
   0x7   : > { %p63_p3 = scmp.ne.s32.totalorder %s299_s7, %s295_s6  ;;  %p64_p4 = scmp.eq.s32.totalorder %s194_s11, 1 }
   0x8   : > { %s356_s15 = scalar_select %p45_p1, %s303_s8, %s47_s13  }
   0x9   : > { %p358_p5 = por %p58_p2, %p57_p0  ;;  %p362_p6 = por %p64_p4, %p63_p3 }
   0xa   : > { %p197_p7 = scmp.ge.s32.totalorder %s307_s9, 1  ;;  %p89_p8 = scmp.lt.s32.totalorder %s307_s9, 3 }
   0xc   : > { %p90_p9 = pnand %p197_p7, %p89_p8 }
   0xd   : > { %p108_p10 = scmp.lt.s32.totalorder (!%p90_p9), %s341_s10, 1  ;;  %vm114_vm0 = vcmask (!%p90_p9), 257024   ;;  %s105_s23 = sand.u32 (!%p90_p9), 1, %s299_s7  }
   0xe   : > { %93 = sbr.rel (%p90_p9) target bundleno = 198 (0xc6), region = 24  ;;  %s198_s24 = sshll.u32 (!%p90_p9), %s105_s23, 2 }
   0xf   : > { %s201_s25 = sshll.u32 (!%p90_p9), %s341_s10, 6  ;;  %s107_s26 = scalar_lea.vmem (!%p90_p9), [#allocation2], %s198_s24 }
  0x10   : > { %s135_s27 = sshll.u32 (!%p90_p9), %s107_s26, 4  ;;  %s378_s30 = scalar_lea.hbm (!%p90_p9), %s421_s1, %s201_s25  ;;  %s380_s27 = int_to_ptr.vmem [resolvable:$true] %s135_s27 }
  0x11   : > { %s122_s2 = scalar_lea.sflag (!%p90_p9), [#allocation3], %s105_s23  ;;  %s245_s3 = scalar_lea.vmem (!%p90_p9), %s380_s27, 64 }
  0x12   : > { %p246_p11 = scmp.ne.s32.totalorder (!%p90_p9), %s380_s27, %s245_s3  ;;  %s309_s4 = smov (!%p90_p9), [#allocation2]  }
  0x13   : > { %s249_s5 = sshll.u32 (!%p90_p9), %s309_s4, 4  ;;  %s250_s5 = int_to_ptr.vmem [resolvable:$false] %s249_s5 }
  0x14   : > { %p247_p12 = pnand (!%p90_p9), %p246_p11, %p358_p5  ;;  %p252_p0 = scmp.lt.s32.totalorder (!%p90_p9), %s380_s27, %s250_s5 }
  0x15   : > { %s109_s18 = scalar_select %p108_p10, %s341_s10, 1 }
  0x16   : > { %p248_p13 = pneg %p247_p12  ;;  %s251_s10 = scalar_lea.vmem %s250_s5, 128 }
  0x17   : > { %s199_s19 = sshll.u32 %s109_s18, 2  ;;  %p253_p1 = scmp.lt.s32.totalorder %s251_s10, %s245_s3 }
  0x18   : > { %s111_s22 = scalar_lea.vmem %s420_s0, %s199_s19 }
  0x19   : > { %v112_v0 = vld [vmem:[%s111_s22] sm:$0xf]  ;;  %p254_p2 = por %p253_p1, %p252_p0 }
  0x1a   : > { %v113_v1 = vmul.f32 %v112_v0, %v112_v0 }
  0x1b   : > { %p255_p3 = pnand %p254_p2, %p248_p13 }
  0x1c   : > { %v115_v2 = vsel %vm114_vm0, %v113_v1, 0.0 }
  0x1d   : > { %116 = vadd.xlane.f32.xlu0 %v115_v2 }
  0xaa   : > { %v117_v3 = vpop.xlane.xlu0 %116 }
  0xab   : > { %243 = vrsqrt.f32 %v117_v3 }
  0xb5   : > { %v244_v4 = vpop.eup %243 }
  0xb6   : > { %v119_v5 = vmul.f32 %v244_v4, %v112_v0 }
  0xb8   : > { %120 = vst.msk [vmem:[%s107_s26] sm:$0xf] %vm114_vm0, %v119_v5 }
  0xb9   : > { %258 = shalt.err (!%p255_p3)
}
  0xba   : > { %s259_s11 = scalar_lea.hbm %s378_s30, 64  ;;  %s263_s18 = scalar_lea.hbm %s421_s1, 128 }
  0xbb   : > { %p260_p4 = scmp.ne.s32.totalorder %s378_s30, %s259_s11  ;;  %p264_p9 = scmp.lt.u32.totalorder %s378_s30, %s421_s1 }
  0xbc   : > { %p265_p10 = scmp.lt.u32.totalorder %s263_s18, %s259_s11  ;;  %p267_p12 = scmp.lt.u32.totalorder %s259_s11, %s378_s30 }
  0xbd   : > { %p261_p7 = pnand %p260_p4, %p358_p5 }
  0xbe   : > { %p266_p11 = por %p265_p10, %p264_p9 }
  0xbf   : > { %p262_p8 = pneg %p261_p7 }
  0xc0   : > { %p268_p13 = por %p267_p12, %p266_p11 }
  0xc2   : > { %p269_p0 = pnand %p268_p13, %p262_p8 }
  0xc4   : > { %272 = shalt.err (!%p269_p0)
}
  0xc5   : > { %204 = dma.vmem_to_hbm [thread:$0]  (%p358_p5), %s380_s27, 64, %s378_s30, %s122_s2  }
  0xc6 PF: > { %p210_p1 = scmp.ge.s32.totalorder %s307_s9, 2  ;;  %s147_s21 = sand.u32 1, %s295_s6  }
  0xc7   : > { %s148_s22 = scalar_lea.sflag [#allocation3], %s147_s21 }
  0xc8   : > { %p207_p2 = pnand %p210_p1, %p362_p6 }
  0xca   : > { %290 = dma.done.wait (!%p207_p2), %s148_s22, 64  }
  0xcb   : > { %292 = vsyncadd (!%p207_p2), %s148_s22, 4294967232  ;;  %p11_p3 = scmp.ge.s32.totalorder %s345_s12, 4   ;;  %s424_s6 = smov %s299_s7 }
  0xcc   : > { %s425_s7 = smov %s303_s8  ;;  %s426_s8 = smov %s356_s15 }
  0xcd   : > { %s427_s9 = smov %s345_s12  ;;  %13 = sbr.rel (!%p11_p3) target bundleno = 3 (0x3), region = 59 }
  0xd4   :  { %153 = vsyncpa [#allocation3], 1 }
  0xd5   :  { %155 = vsyncpa [#allocation3 + $0x1], 1 }

// kernel: prompted_vit_forward.19
= control target key start
LH: loop header
LB: loop body
LE: loop exit
PB: predicated region body
PF: predicated region fallthrough
CT: control target
= control target key end

     0   :  { %vm11_vm0 = vcmask 254976   ;;  %s85_s0 = inlined_call_operand.vmem [shape: f32[2,32], index: 0, kind: input, shape index: {}]   ;;  %s86_s1 = inlined_call_operand.hbm [shape: f32[2,32], index: 1, kind: output, shape index: {}]  }
   0x1   :  { %v9_v0 = vld [vmem:[%s85_s0] sm:$0x3] }
   0x2   :  { %6 = vsyncpa [#allocation3], 0  ;;  %v10_v1 = vmul.f32 %v9_v0, %v9_v0  ;;  %s59_s8 = smov [#allocation2]  }
   0x3   :  { %s24_s9 = sshll.u32 %s59_s8, 4  ;;  %s25_s9 = int_to_ptr.vmem [resolvable:$true] %s24_s9 }
   0x4   :  { %v12_v2 = vsel %vm11_vm0, %v10_v1, 0.0  ;;  %s35_s10 = scalar_lea.vmem %s25_s9, 32  ;;  %p40_p1 = scmp.lt.s32.totalorder %s25_s9, %s25_s9 }
   0x5   :  { %13 = vadd.xlane.f32.xlu0 %v12_v2  ;;  %p36_p0 = scmp.ne.s32.totalorder %s25_s9, %s35_s10  ;;  %p41_p2 = scmp.lt.s32.totalorder %s35_s10, %s35_s10 }
   0x7   :  { %p42_p3 = por %p41_p2, %p40_p1 }
   0x9   :  { %p43_p4 = pnand %p42_p3, %p36_p0 }
  0x92   :  { %v14_v3 = vpop.xlane.xlu0 %13 }
  0x93   :  { %33 = vrsqrt.f32 %v14_v3 }
  0x9d   :  { %v34_v4 = vpop.eup %33 }
  0x9e   :  { %v16_v5 = vmul.f32 %v34_v4, %v9_v0 }
  0xa0   :  { %17 = vst.msk [vmem:[#allocation2] sm:$0x3] %vm11_vm0, %v16_v5 }
  0xa1   :  { %46 = shalt.err (!%p43_p4)
}
  0xa2   :  { %s47_s12 = scalar_lea.hbm %s86_s1, 32 }
  0xa3   :  { %p48_p5 = scmp.ne.s32.totalorder %s86_s1, %s47_s12  ;;  %p51_p6 = scmp.lt.u32.totalorder %s47_s12, %s86_s1 }
  0xa5   :  { %p53_p7 = pnand %p51_p6, %p48_p5 }
  0xa7   :  { %56 = shalt.err (!%p53_p7)
}
  0xa8   :  { %27 = dma.vmem_to_hbm [thread:$0]  %s25_s9, 32, %s86_s1, [#allocation3]  }
  0xa9   :  { %57 = dma.done.wait [#allocation3], 32  }
  0xaa   :  { %58 = vsyncadd [#allocation3], 4294967264 }
  0xab   :  { %31 = vsyncpa [#allocation3], 1 }

</bundles_post_ra>
